<compile_context>
chip_gen: v5e
topology: v5e:2x2
jax: 0.10.0
libtpu: 0.0.40
codegen_flags: <defaults>
</compile_context>

<pallas_src>
import functools

import jax
import jax.numpy as jnp
from jax.experimental import pallas as pl
from jax.experimental.pallas import tpu as pltpu


def _decoder_kernel(scale,
                    bc_ref,                       # SMEM (1,1): fused fc bias
                    x_ref, wih_ref, whh_ref, b_ref, wc_ref,
                    out_ref):
    """All sen_length LSTM steps + fused fc1/fc2 + sigmoid * (voc_size - 1)."""
    H = whh_ref.shape[0]
    B, T = out_ref.shape

    # Step-invariant input projection: x @ W_ih + (b_ih + b_hh). Computed once.
    xg = jnp.dot(x_ref[...], wih_ref[...],
                 preferred_element_type=jnp.float32) + b_ref[...]
    w_hh = whh_ref[...]
    w_c = wc_ref[...]            # (H, 1)  = W_fc1^T @ W_fc2^T
    b_c = bc_ref[0, 0]           # scalar  = b_fc1 @ W_fc2^T + b_fc2

    # One-hot column selector for the lane-dense output accumulator.
    col = jax.lax.broadcasted_iota(jnp.int32, (B, T), 1)

    def step(t, carry):
        h, c, acc = carry
        gates = xg + jnp.dot(h, w_hh, preferred_element_type=jnp.float32)
        i_g = jax.nn.sigmoid(gates[:, 0 * H:1 * H])
        f_g = jax.nn.sigmoid(gates[:, 1 * H:2 * H])
        g_g = jnp.tanh(gates[:, 2 * H:3 * H])
        o_g = jax.nn.sigmoid(gates[:, 3 * H:4 * H])
        c = f_g * c + i_g * g_g
        h = o_g * jnp.tanh(c)
        # fused fc2(fc1(h)), then sigmoid * (voc_size - 1)
        y = jax.nn.sigmoid(jnp.dot(h, w_c, preferred_element_type=jnp.float32)
                           + b_c) * scale                        # (B, 1)
        acc = acc + jnp.where(col == t, y, 0.0)                  # place column t
        return h, c, acc

    h0 = jnp.zeros((B, H), jnp.float32)
    c0 = jnp.zeros((B, H), jnp.float32)
    acc0 = jnp.zeros((B, T), jnp.float32)
    # Short fixed trip count: unroll for LLO scheduling visibility.
    _, _, acc = jax.lax.fori_loop(0, T, step, (h0, c0, acc0),
                                  unroll=True if T <= 16 else 4)
    out_ref[...] = acc           # single lane-dense store / writeback


def lstm_decoder_forward(features, params, *, voc_size, sen_length):
    B, F = features.shape
    H = params["w_hh"].shape[0]

    # Exact composition of fc1 and fc2 (no nonlinearity between them, f32).
    w_comb = params["w_fc1"] @ params["w_fc2"]                    # (H, 1)
    b_comb = params["b_fc1"] @ params["w_fc2"] + params["b_fc2"]  # (1, 1)

    kernel = functools.partial(_decoder_kernel, float(voc_size - 1))

    out = pl.pallas_call(
        kernel,
        out_shape=jax.ShapeDtypeStruct((B, sen_length), jnp.float32),
        grid=(1,),                                   # single kernel invocation
        in_specs=[
            pl.BlockSpec(memory_space=pltpu.MemorySpace.SMEM),   # b_comb scalar
            pl.BlockSpec((B, F), lambda i: (0, 0)),              # features
            pl.BlockSpec((F, 4 * H), lambda i: (0, 0)),          # W_ih^T
            pl.BlockSpec((H, 4 * H), lambda i: (0, 0)),          # W_hh^T
            pl.BlockSpec((1, 4 * H), lambda i: (0, 0)),          # b_ih + b_hh
            pl.BlockSpec((H, 1), lambda i: (0, 0)),              # fused fc weight
        ],
        out_specs=pl.BlockSpec((B, sen_length), lambda i: (0, 0)),
        compiler_params=pltpu.CompilerParams(
            dimension_semantics=("arbitrary",)),
    )(b_comb, features, params["w_ih"], params["w_hh"], params["b"], w_comb)

    # PyTorch: torch.cat(output, dim=0).squeeze()  ->  (sen_length, B) squeezed
    return jnp.squeeze(out.T)


def reference_forward(features, params, *, voc_size, sen_length):
    """Pure-JAX reference with identical semantics (for validation)."""
    B, _ = features.shape
    H = params["w_hh"].shape[0]
    h = jnp.zeros((B, H), jnp.float32)
    c = jnp.zeros((B, H), jnp.float32)
    xg = features @ params["w_ih"] + params["b"][0]
    outs = []
    for _ in range(sen_length):
        gates = xg + h @ params["w_hh"]
        i = jax.nn.sigmoid(gates[:, 0 * H:1 * H])
        f = jax.nn.sigmoid(gates[:, 1 * H:2 * H])
        g = jnp.tanh(gates[:, 2 * H:3 * H])
        o = jax.nn.sigmoid(gates[:, 3 * H:4 * H])
        c = f * c + i * g
        h = o * jnp.tanh(c)
        z = h @ params["w_fc1"] + params["b_fc1"][0]
        y = z @ params["w_fc2"] + params["b_fc2"][0]
        outs.append(jax.nn.sigmoid(y) * (voc_size - 1.0))
    return jnp.squeeze(jnp.stack(outs, axis=0))


def init_params(key, fea_dim, hidden_dim):
    ks = jax.random.split(key, 8)
    s = 0.1
    return {
        "w_ih":  jax.random.normal(ks[0], (fea_dim, 4 * hidden_dim), jnp.float32) * s,
        "w_hh":  jax.random.normal(ks[1], (hidden_dim, 4 * hidden_dim), jnp.float32) * s,
        # combined bias = b_ih + b_hh (kept 2D for TPU-friendly broadcasting)
        "b":     jax.random.normal(ks[2], (1, 4 * hidden_dim), jnp.float32) * s,
        "w_fc1": jax.random.normal(ks[3], (hidden_dim, hidden_dim), jnp.float32) * s,
        "b_fc1": jax.random.normal(ks[4], (1, hidden_dim), jnp.float32) * s,
        "w_fc2": jax.random.normal(ks[5], (hidden_dim, 1), jnp.float32) * s,
        "b_fc2": jax.random.normal(ks[6], (1, 1), jnp.float32) * s,
    }


if __name__ == "__main__":
    # Small, forward-consistent shapes.
    batch, fea_dim, hidden_dim = 4, 8, 32
    voc_size, sen_length = 100, 8

    key = jax.random.PRNGKey(0)
    k_feat, k_par = jax.random.split(key)
    features = jax.random.normal(k_feat, (batch, fea_dim), jnp.float32)
    params = init_params(k_par, fea_dim, hidden_dim)

    out = lstm_decoder_forward(features, params,
                               voc_size=voc_size, sen_length=sen_length)
    out = jax.block_until_ready(out)

    ref = reference_forward(features, params,
                            voc_size=voc_size, sen_length=sen_length)
    assert out.shape == (sen_length, batch), out.shape
    assert jnp.allclose(out, ref, rtol=1e-4, atol=1e-3), (out, ref)

    print("KERNEL_OK")
</pallas_src>

<mosaic_0001>
module attributes {stable_mosaic.version = 11 : i64} {
  func.func @_decoder_kernel(%arg0: i32, %arg1: memref<1x1xf32, #tpu.memory_space<smem>>, %arg2: memref<4x8xf32, #tpu.memory_space<vmem>>, %arg3: memref<8x128xf32, #tpu.memory_space<vmem>>, %arg4: memref<32x128xf32, #tpu.memory_space<vmem>>, %arg5: memref<1x128xf32, #tpu.memory_space<vmem>>, %arg6: memref<32x1xf32, #tpu.memory_space<vmem>>, %arg7: memref<4x8xf32, #tpu.memory_space<vmem>>) attributes {dimension_semantics = [#tpu.dimension_semantics<arbitrary>], iteration_bounds = array<i64: 1>, scalar_prefetch = 0 : i64, scratch_operands = 0 : i64, tpu.core_type = #tpu.core_type<tc>, window_params = [{transform_indices = @transform_0, window_bounds = array<i64: 1, 1>}, {pipeline_mode = #tpu.pipeline_mode<synchronous>, transform_indices = @transform_1, window_bounds = array<i64: 4, 8>}, {pipeline_mode = #tpu.pipeline_mode<synchronous>, transform_indices = @transform_2, window_bounds = array<i64: 8, 128>}, {pipeline_mode = #tpu.pipeline_mode<synchronous>, transform_indices = @transform_3, window_bounds = array<i64: 32, 128>}, {pipeline_mode = #tpu.pipeline_mode<synchronous>, transform_indices = @transform_4, window_bounds = array<i64: 1, 128>}, {pipeline_mode = #tpu.pipeline_mode<synchronous>, transform_indices = @transform_5, window_bounds = array<i64: 32, 1>}, {pipeline_mode = #tpu.pipeline_mode<synchronous>, transform_indices = @transform_6, window_bounds = array<i64: 4, 8>}]} {
    %c0 = arith.constant 0 : index
    %c0_0 = arith.constant 0 : index
    %0 = vector.load %arg2[%c0, %c0_0] : memref<4x8xf32, #tpu.memory_space<vmem>>, vector<4x8xf32>
    %c0_1 = arith.constant 0 : index
    %c0_2 = arith.constant 0 : index
    %1 = vector.load %arg3[%c0_1, %c0_2] : memref<8x128xf32, #tpu.memory_space<vmem>>, vector<8x128xf32>
    %cst = arith.constant dense<0.000000e+00> : vector<4x128xf32>
    %2 = tpu.matmul %0, %1, %cst {dimension_numbers = #tpu.dot_dimension_numbers<[1], [0], [0], [1], [0, 0, 1, 1], [], []>} : vector<4x8xf32>, vector<8x128xf32>, vector<4x128xf32> -> vector<4x128xf32>
    %c0_3 = arith.constant 0 : index
    %c0_4 = arith.constant 0 : index
    %3 = vector.load %arg5[%c0_3, %c0_4] : memref<1x128xf32, #tpu.memory_space<vmem>>, vector<1x128xf32>
    %4 = vector.broadcast %3 : vector<1x128xf32> to vector<4x128xf32>
    %5 = arith.addf %2, %4 : vector<4x128xf32>
    %c0_5 = arith.constant 0 : index
    %c0_6 = arith.constant 0 : index
    %6 = vector.load %arg4[%c0_5, %c0_6] : memref<32x128xf32, #tpu.memory_space<vmem>>, vector<32x128xf32>
    %c0_7 = arith.constant 0 : index
    %c0_8 = arith.constant 0 : index
    %7 = vector.load %arg6[%c0_7, %c0_8] : memref<32x1xf32, #tpu.memory_space<vmem>>, vector<32x1xf32>
    %c0_9 = arith.constant 0 : index
    %c0_10 = arith.constant 0 : index
    %8 = memref.load %arg1[%c0_9, %c0_10] : memref<1x1xf32, #tpu.memory_space<smem>>
    %9 = tpu.iota {dimensions = array<i32: 1>} : vector<4x8xi32>
    %cst_11 = arith.constant 0.000000e+00 : f32
    %10 = vector.broadcast %cst_11 : f32 to vector<4x32xf32>
    %cst_12 = arith.constant 0.000000e+00 : f32
    %11 = vector.broadcast %cst_12 : f32 to vector<4x32xf32>
    %cst_13 = arith.constant 0.000000e+00 : f32
    %12 = vector.broadcast %cst_13 : f32 to vector<4x8xf32>
    %c0_i32 = arith.constant 0 : i32
    %cst_14 = arith.constant dense<0.000000e+00> : vector<4x128xf32>
    %13 = tpu.matmul %10, %6, %cst_14 {dimension_numbers = #tpu.dot_dimension_numbers<[1], [0], [0], [1], [0, 0, 1, 1], [], []>} : vector<4x32xf32>, vector<32x128xf32>, vector<4x128xf32> -> vector<4x128xf32>
    %14 = arith.addf %5, %13 : vector<4x128xf32>
    %15 = vector.extract_strided_slice %14 {offsets = [0, 0], sizes = [4, 32], strides = [1, 1]} : vector<4x128xf32> to vector<4x32xf32>
    %16 = arith.negf %15 : vector<4x32xf32>
    %17 = math.exp %16 : vector<4x32xf32>
    %cst_15 = arith.constant 1.000000e+00 : f32
    %18 = vector.broadcast %cst_15 : f32 to vector<4x32xf32>
    %19 = arith.addf %18, %17 : vector<4x32xf32>
    %20 = arith.divf %18, %19 : vector<4x32xf32>
    %21 = vector.extract_strided_slice %14 {offsets = [0, 32], sizes = [4, 32], strides = [1, 1]} : vector<4x128xf32> to vector<4x32xf32>
    %22 = arith.negf %21 : vector<4x32xf32>
    %23 = math.exp %22 : vector<4x32xf32>
    %cst_16 = arith.constant 1.000000e+00 : f32
    %24 = vector.broadcast %cst_16 : f32 to vector<4x32xf32>
    %25 = arith.addf %24, %23 : vector<4x32xf32>
    %26 = arith.divf %24, %25 : vector<4x32xf32>
    %27 = vector.extract_strided_slice %14 {offsets = [0, 64], sizes = [4, 32], strides = [1, 1]} : vector<4x128xf32> to vector<4x32xf32>
    %28 = math.tanh %27 : vector<4x32xf32>
    %29 = vector.extract_strided_slice %14 {offsets = [0, 96], sizes = [4, 32], strides = [1, 1]} : vector<4x128xf32> to vector<4x32xf32>
    %30 = arith.negf %29 : vector<4x32xf32>
    %31 = math.exp %30 : vector<4x32xf32>
    %cst_17 = arith.constant 1.000000e+00 : f32
    %32 = vector.broadcast %cst_17 : f32 to vector<4x32xf32>
    %33 = arith.addf %32, %31 : vector<4x32xf32>
    %34 = arith.divf %32, %33 : vector<4x32xf32>
    %35 = arith.mulf %26, %11 : vector<4x32xf32>
    %36 = arith.mulf %20, %28 : vector<4x32xf32>
    %37 = arith.addf %35, %36 : vector<4x32xf32>
    %38 = math.tanh %37 : vector<4x32xf32>
    %39 = arith.mulf %34, %38 : vector<4x32xf32>
    %cst_18 = arith.constant dense<0.000000e+00> : vector<4x1xf32>
    %40 = tpu.matmul %39, %7, %cst_18 {dimension_numbers = #tpu.dot_dimension_numbers<[1], [0], [0], [1], [0, 0, 1, 1], [], []>} : vector<4x32xf32>, vector<32x1xf32>, vector<4x1xf32> -> vector<4x1xf32>
    %41 = vector.broadcast %8 : f32 to vector<4x1xf32>
    %42 = arith.addf %40, %41 : vector<4x1xf32>
    %43 = arith.negf %42 : vector<4x1xf32>
    %44 = math.exp %43 : vector<4x1xf32>
    %cst_19 = arith.constant 1.000000e+00 : f32
    %45 = vector.broadcast %cst_19 : f32 to vector<4x1xf32>
    %46 = arith.addf %45, %44 : vector<4x1xf32>
    %47 = arith.divf %45, %46 : vector<4x1xf32>
    %cst_20 = arith.constant 9.900000e+01 : f32
    %48 = vector.broadcast %cst_20 : f32 to vector<4x1xf32>
    %49 = arith.mulf %47, %48 : vector<4x1xf32>
    %50 = vector.broadcast %c0_i32 : i32 to vector<4x8xi32>
    %51 = arith.cmpi eq, %9, %50 : vector<4x8xi32>
    %cst_21 = arith.constant 0.000000e+00 : f32
    %52 = vector.shape_cast %49 : vector<4x1xf32> to vector<4x1xf32>
    %53 = vector.broadcast %52 : vector<4x1xf32> to vector<4x8xf32>
    %54 = vector.broadcast %cst_21 : f32 to vector<4x8xf32>
    %55 = arith.select %51, %53, %54 : vector<4x8xi1>, vector<4x8xf32>
    %56 = arith.addf %12, %55 : vector<4x8xf32>
    %c1_i32 = arith.constant 1 : i32
    %cst_22 = arith.constant dense<0.000000e+00> : vector<4x128xf32>
    %57 = tpu.matmul %39, %6, %cst_22 {dimension_numbers = #tpu.dot_dimension_numbers<[1], [0], [0], [1], [0, 0, 1, 1], [], []>} : vector<4x32xf32>, vector<32x128xf32>, vector<4x128xf32> -> vector<4x128xf32>
    %58 = arith.addf %5, %57 : vector<4x128xf32>
    %59 = vector.extract_strided_slice %58 {offsets = [0, 0], sizes = [4, 32], strides = [1, 1]} : vector<4x128xf32> to vector<4x32xf32>
    %60 = arith.negf %59 : vector<4x32xf32>
    %61 = math.exp %60 : vector<4x32xf32>
    %cst_23 = arith.constant 1.000000e+00 : f32
    %62 = vector.broadcast %cst_23 : f32 to vector<4x32xf32>
    %63 = arith.addf %62, %61 : vector<4x32xf32>
    %64 = arith.divf %62, %63 : vector<4x32xf32>
    %65 = vector.extract_strided_slice %58 {offsets = [0, 32], sizes = [4, 32], strides = [1, 1]} : vector<4x128xf32> to vector<4x32xf32>
    %66 = arith.negf %65 : vector<4x32xf32>
    %67 = math.exp %66 : vector<4x32xf32>
    %cst_24 = arith.constant 1.000000e+00 : f32
    %68 = vector.broadcast %cst_24 : f32 to vector<4x32xf32>
    %69 = arith.addf %68, %67 : vector<4x32xf32>
    %70 = arith.divf %68, %69 : vector<4x32xf32>
    %71 = vector.extract_strided_slice %58 {offsets = [0, 64], sizes = [4, 32], strides = [1, 1]} : vector<4x128xf32> to vector<4x32xf32>
    %72 = math.tanh %71 : vector<4x32xf32>
    %73 = vector.extract_strided_slice %58 {offsets = [0, 96], sizes = [4, 32], strides = [1, 1]} : vector<4x128xf32> to vector<4x32xf32>
    %74 = arith.negf %73 : vector<4x32xf32>
    %75 = math.exp %74 : vector<4x32xf32>
    %cst_25 = arith.constant 1.000000e+00 : f32
    %76 = vector.broadcast %cst_25 : f32 to vector<4x32xf32>
    %77 = arith.addf %76, %75 : vector<4x32xf32>
    %78 = arith.divf %76, %77 : vector<4x32xf32>
    %79 = arith.mulf %70, %37 : vector<4x32xf32>
    %80 = arith.mulf %64, %72 : vector<4x32xf32>
    %81 = arith.addf %79, %80 : vector<4x32xf32>
    %82 = math.tanh %81 : vector<4x32xf32>
    %83 = arith.mulf %78, %82 : vector<4x32xf32>
    %cst_26 = arith.constant dense<0.000000e+00> : vector<4x1xf32>
    %84 = tpu.matmul %83, %7, %cst_26 {dimension_numbers = #tpu.dot_dimension_numbers<[1], [0], [0], [1], [0, 0, 1, 1], [], []>} : vector<4x32xf32>, vector<32x1xf32>, vector<4x1xf32> -> vector<4x1xf32>
    %85 = vector.broadcast %8 : f32 to vector<4x1xf32>
    %86 = arith.addf %84, %85 : vector<4x1xf32>
    %87 = arith.negf %86 : vector<4x1xf32>
    %88 = math.exp %87 : vector<4x1xf32>
    %cst_27 = arith.constant 1.000000e+00 : f32
    %89 = vector.broadcast %cst_27 : f32 to vector<4x1xf32>
    %90 = arith.addf %89, %88 : vector<4x1xf32>
    %91 = arith.divf %89, %90 : vector<4x1xf32>
    %cst_28 = arith.constant 9.900000e+01 : f32
    %92 = vector.broadcast %cst_28 : f32 to vector<4x1xf32>
    %93 = arith.mulf %91, %92 : vector<4x1xf32>
    %94 = vector.broadcast %c1_i32 : i32 to vector<4x8xi32>
    %95 = arith.cmpi eq, %9, %94 : vector<4x8xi32>
    %cst_29 = arith.constant 0.000000e+00 : f32
    %96 = vector.shape_cast %93 : vector<4x1xf32> to vector<4x1xf32>
    %97 = vector.broadcast %96 : vector<4x1xf32> to vector<4x8xf32>
    %98 = vector.broadcast %cst_29 : f32 to vector<4x8xf32>
    %99 = arith.select %95, %97, %98 : vector<4x8xi1>, vector<4x8xf32>
    %100 = arith.addf %56, %99 : vector<4x8xf32>
    %c2_i32 = arith.constant 2 : i32
    %cst_30 = arith.constant dense<0.000000e+00> : vector<4x128xf32>
    %101 = tpu.matmul %83, %6, %cst_30 {dimension_numbers = #tpu.dot_dimension_numbers<[1], [0], [0], [1], [0, 0, 1, 1], [], []>} : vector<4x32xf32>, vector<32x128xf32>, vector<4x128xf32> -> vector<4x128xf32>
    %102 = arith.addf %5, %101 : vector<4x128xf32>
    %103 = vector.extract_strided_slice %102 {offsets = [0, 0], sizes = [4, 32], strides = [1, 1]} : vector<4x128xf32> to vector<4x32xf32>
    %104 = arith.negf %103 : vector<4x32xf32>
    %105 = math.exp %104 : vector<4x32xf32>
    %cst_31 = arith.constant 1.000000e+00 : f32
    %106 = vector.broadcast %cst_31 : f32 to vector<4x32xf32>
    %107 = arith.addf %106, %105 : vector<4x32xf32>
    %108 = arith.divf %106, %107 : vector<4x32xf32>
    %109 = vector.extract_strided_slice %102 {offsets = [0, 32], sizes = [4, 32], strides = [1, 1]} : vector<4x128xf32> to vector<4x32xf32>
    %110 = arith.negf %109 : vector<4x32xf32>
    %111 = math.exp %110 : vector<4x32xf32>
    %cst_32 = arith.constant 1.000000e+00 : f32
    %112 = vector.broadcast %cst_32 : f32 to vector<4x32xf32>
    %113 = arith.addf %112, %111 : vector<4x32xf32>
    %114 = arith.divf %112, %113 : vector<4x32xf32>
    %115 = vector.extract_strided_slice %102 {offsets = [0, 64], sizes = [4, 32], strides = [1, 1]} : vector<4x128xf32> to vector<4x32xf32>
    %116 = math.tanh %115 : vector<4x32xf32>
    %117 = vector.extract_strided_slice %102 {offsets = [0, 96], sizes = [4, 32], strides = [1, 1]} : vector<4x128xf32> to vector<4x32xf32>
    %118 = arith.negf %117 : vector<4x32xf32>
    %119 = math.exp %118 : vector<4x32xf32>
    %cst_33 = arith.constant 1.000000e+00 : f32
    %120 = vector.broadcast %cst_33 : f32 to vector<4x32xf32>
    %121 = arith.addf %120, %119 : vector<4x32xf32>
    %122 = arith.divf %120, %121 : vector<4x32xf32>
    %123 = arith.mulf %114, %81 : vector<4x32xf32>
    %124 = arith.mulf %108, %116 : vector<4x32xf32>
    %125 = arith.addf %123, %124 : vector<4x32xf32>
    %126 = math.tanh %125 : vector<4x32xf32>
    %127 = arith.mulf %122, %126 : vector<4x32xf32>
    %cst_34 = arith.constant dense<0.000000e+00> : vector<4x1xf32>
    %128 = tpu.matmul %127, %7, %cst_34 {dimension_numbers = #tpu.dot_dimension_numbers<[1], [0], [0], [1], [0, 0, 1, 1], [], []>} : vector<4x32xf32>, vector<32x1xf32>, vector<4x1xf32> -> vector<4x1xf32>
    %129 = vector.broadcast %8 : f32 to vector<4x1xf32>
    %130 = arith.addf %128, %129 : vector<4x1xf32>
    %131 = arith.negf %130 : vector<4x1xf32>
    %132 = math.exp %131 : vector<4x1xf32>
    %cst_35 = arith.constant 1.000000e+00 : f32
    %133 = vector.broadcast %cst_35 : f32 to vector<4x1xf32>
    %134 = arith.addf %133, %132 : vector<4x1xf32>
    %135 = arith.divf %133, %134 : vector<4x1xf32>
    %cst_36 = arith.constant 9.900000e+01 : f32
    %136 = vector.broadcast %cst_36 : f32 to vector<4x1xf32>
    %137 = arith.mulf %135, %136 : vector<4x1xf32>
    %138 = vector.broadcast %c2_i32 : i32 to vector<4x8xi32>
    %139 = arith.cmpi eq, %9, %138 : vector<4x8xi32>
    %cst_37 = arith.constant 0.000000e+00 : f32
    %140 = vector.shape_cast %137 : vector<4x1xf32> to vector<4x1xf32>
    %141 = vector.broadcast %140 : vector<4x1xf32> to vector<4x8xf32>
    %142 = vector.broadcast %cst_37 : f32 to vector<4x8xf32>
    %143 = arith.select %139, %141, %142 : vector<4x8xi1>, vector<4x8xf32>
    %144 = arith.addf %100, %143 : vector<4x8xf32>
    %c3_i32 = arith.constant 3 : i32
    %cst_38 = arith.constant dense<0.000000e+00> : vector<4x128xf32>
    %145 = tpu.matmul %127, %6, %cst_38 {dimension_numbers = #tpu.dot_dimension_numbers<[1], [0], [0], [1], [0, 0, 1, 1], [], []>} : vector<4x32xf32>, vector<32x128xf32>, vector<4x128xf32> -> vector<4x128xf32>
    %146 = arith.addf %5, %145 : vector<4x128xf32>
    %147 = vector.extract_strided_slice %146 {offsets = [0, 0], sizes = [4, 32], strides = [1, 1]} : vector<4x128xf32> to vector<4x32xf32>
    %148 = arith.negf %147 : vector<4x32xf32>
    %149 = math.exp %148 : vector<4x32xf32>
    %cst_39 = arith.constant 1.000000e+00 : f32
    %150 = vector.broadcast %cst_39 : f32 to vector<4x32xf32>
    %151 = arith.addf %150, %149 : vector<4x32xf32>
    %152 = arith.divf %150, %151 : vector<4x32xf32>
    %153 = vector.extract_strided_slice %146 {offsets = [0, 32], sizes = [4, 32], strides = [1, 1]} : vector<4x128xf32> to vector<4x32xf32>
    %154 = arith.negf %153 : vector<4x32xf32>
    %155 = math.exp %154 : vector<4x32xf32>
    %cst_40 = arith.constant 1.000000e+00 : f32
    %156 = vector.broadcast %cst_40 : f32 to vector<4x32xf32>
    %157 = arith.addf %156, %155 : vector<4x32xf32>
    %158 = arith.divf %156, %157 : vector<4x32xf32>
    %159 = vector.extract_strided_slice %146 {offsets = [0, 64], sizes = [4, 32], strides = [1, 1]} : vector<4x128xf32> to vector<4x32xf32>
    %160 = math.tanh %159 : vector<4x32xf32>
    %161 = vector.extract_strided_slice %146 {offsets = [0, 96], sizes = [4, 32], strides = [1, 1]} : vector<4x128xf32> to vector<4x32xf32>
    %162 = arith.negf %161 : vector<4x32xf32>
    %163 = math.exp %162 : vector<4x32xf32>
    %cst_41 = arith.constant 1.000000e+00 : f32
    %164 = vector.broadcast %cst_41 : f32 to vector<4x32xf32>
    %165 = arith.addf %164, %163 : vector<4x32xf32>
    %166 = arith.divf %164, %165 : vector<4x32xf32>
    %167 = arith.mulf %158, %125 : vector<4x32xf32>
    %168 = arith.mulf %152, %160 : vector<4x32xf32>
    %169 = arith.addf %167, %168 : vector<4x32xf32>
    %170 = math.tanh %169 : vector<4x32xf32>
    %171 = arith.mulf %166, %170 : vector<4x32xf32>
    %cst_42 = arith.constant dense<0.000000e+00> : vector<4x1xf32>
    %172 = tpu.matmul %171, %7, %cst_42 {dimension_numbers = #tpu.dot_dimension_numbers<[1], [0], [0], [1], [0, 0, 1, 1], [], []>} : vector<4x32xf32>, vector<32x1xf32>, vector<4x1xf32> -> vector<4x1xf32>
    %173 = vector.broadcast %8 : f32 to vector<4x1xf32>
    %174 = arith.addf %172, %173 : vector<4x1xf32>
    %175 = arith.negf %174 : vector<4x1xf32>
    %176 = math.exp %175 : vector<4x1xf32>
    %cst_43 = arith.constant 1.000000e+00 : f32
    %177 = vector.broadcast %cst_43 : f32 to vector<4x1xf32>
    %178 = arith.addf %177, %176 : vector<4x1xf32>
    %179 = arith.divf %177, %178 : vector<4x1xf32>
    %cst_44 = arith.constant 9.900000e+01 : f32
    %180 = vector.broadcast %cst_44 : f32 to vector<4x1xf32>
    %181 = arith.mulf %179, %180 : vector<4x1xf32>
    %182 = vector.broadcast %c3_i32 : i32 to vector<4x8xi32>
    %183 = arith.cmpi eq, %9, %182 : vector<4x8xi32>
    %cst_45 = arith.constant 0.000000e+00 : f32
    %184 = vector.shape_cast %181 : vector<4x1xf32> to vector<4x1xf32>
    %185 = vector.broadcast %184 : vector<4x1xf32> to vector<4x8xf32>
    %186 = vector.broadcast %cst_45 : f32 to vector<4x8xf32>
    %187 = arith.select %183, %185, %186 : vector<4x8xi1>, vector<4x8xf32>
    %188 = arith.addf %144, %187 : vector<4x8xf32>
    %c4_i32 = arith.constant 4 : i32
    %cst_46 = arith.constant dense<0.000000e+00> : vector<4x128xf32>
    %189 = tpu.matmul %171, %6, %cst_46 {dimension_numbers = #tpu.dot_dimension_numbers<[1], [0], [0], [1], [0, 0, 1, 1], [], []>} : vector<4x32xf32>, vector<32x128xf32>, vector<4x128xf32> -> vector<4x128xf32>
    %190 = arith.addf %5, %189 : vector<4x128xf32>
    %191 = vector.extract_strided_slice %190 {offsets = [0, 0], sizes = [4, 32], strides = [1, 1]} : vector<4x128xf32> to vector<4x32xf32>
    %192 = arith.negf %191 : vector<4x32xf32>
    %193 = math.exp %192 : vector<4x32xf32>
    %cst_47 = arith.constant 1.000000e+00 : f32
    %194 = vector.broadcast %cst_47 : f32 to vector<4x32xf32>
    %195 = arith.addf %194, %193 : vector<4x32xf32>
    %196 = arith.divf %194, %195 : vector<4x32xf32>
    %197 = vector.extract_strided_slice %190 {offsets = [0, 32], sizes = [4, 32], strides = [1, 1]} : vector<4x128xf32> to vector<4x32xf32>
    %198 = arith.negf %197 : vector<4x32xf32>
    %199 = math.exp %198 : vector<4x32xf32>
    %cst_48 = arith.constant 1.000000e+00 : f32
    %200 = vector.broadcast %cst_48 : f32 to vector<4x32xf32>
    %201 = arith.addf %200, %199 : vector<4x32xf32>
    %202 = arith.divf %200, %201 : vector<4x32xf32>
    %203 = vector.extract_strided_slice %190 {offsets = [0, 64], sizes = [4, 32], strides = [1, 1]} : vector<4x128xf32> to vector<4x32xf32>
    %204 = math.tanh %203 : vector<4x32xf32>
    %205 = vector.extract_strided_slice %190 {offsets = [0, 96], sizes = [4, 32], strides = [1, 1]} : vector<4x128xf32> to vector<4x32xf32>
    %206 = arith.negf %205 : vector<4x32xf32>
    %207 = math.exp %206 : vector<4x32xf32>
    %cst_49 = arith.constant 1.000000e+00 : f32
    %208 = vector.broadcast %cst_49 : f32 to vector<4x32xf32>
    %209 = arith.addf %208, %207 : vector<4x32xf32>
    %210 = arith.divf %208, %209 : vector<4x32xf32>
    %211 = arith.mulf %202, %169 : vector<4x32xf32>
    %212 = arith.mulf %196, %204 : vector<4x32xf32>
    %213 = arith.addf %211, %212 : vector<4x32xf32>
    %214 = math.tanh %213 : vector<4x32xf32>
    %215 = arith.mulf %210, %214 : vector<4x32xf32>
    %cst_50 = arith.constant dense<0.000000e+00> : vector<4x1xf32>
    %216 = tpu.matmul %215, %7, %cst_50 {dimension_numbers = #tpu.dot_dimension_numbers<[1], [0], [0], [1], [0, 0, 1, 1], [], []>} : vector<4x32xf32>, vector<32x1xf32>, vector<4x1xf32> -> vector<4x1xf32>
    %217 = vector.broadcast %8 : f32 to vector<4x1xf32>
    %218 = arith.addf %216, %217 : vector<4x1xf32>
    %219 = arith.negf %218 : vector<4x1xf32>
    %220 = math.exp %219 : vector<4x1xf32>
    %cst_51 = arith.constant 1.000000e+00 : f32
    %221 = vector.broadcast %cst_51 : f32 to vector<4x1xf32>
    %222 = arith.addf %221, %220 : vector<4x1xf32>
    %223 = arith.divf %221, %222 : vector<4x1xf32>
    %cst_52 = arith.constant 9.900000e+01 : f32
    %224 = vector.broadcast %cst_52 : f32 to vector<4x1xf32>
    %225 = arith.mulf %223, %224 : vector<4x1xf32>
    %226 = vector.broadcast %c4_i32 : i32 to vector<4x8xi32>
    %227 = arith.cmpi eq, %9, %226 : vector<4x8xi32>
    %cst_53 = arith.constant 0.000000e+00 : f32
    %228 = vector.shape_cast %225 : vector<4x1xf32> to vector<4x1xf32>
    %229 = vector.broadcast %228 : vector<4x1xf32> to vector<4x8xf32>
    %230 = vector.broadcast %cst_53 : f32 to vector<4x8xf32>
    %231 = arith.select %227, %229, %230 : vector<4x8xi1>, vector<4x8xf32>
    %232 = arith.addf %188, %231 : vector<4x8xf32>
    %c5_i32 = arith.constant 5 : i32
    %cst_54 = arith.constant dense<0.000000e+00> : vector<4x128xf32>
    %233 = tpu.matmul %215, %6, %cst_54 {dimension_numbers = #tpu.dot_dimension_numbers<[1], [0], [0], [1], [0, 0, 1, 1], [], []>} : vector<4x32xf32>, vector<32x128xf32>, vector<4x128xf32> -> vector<4x128xf32>
    %234 = arith.addf %5, %233 : vector<4x128xf32>
    %235 = vector.extract_strided_slice %234 {offsets = [0, 0], sizes = [4, 32], strides = [1, 1]} : vector<4x128xf32> to vector<4x32xf32>
    %236 = arith.negf %235 : vector<4x32xf32>
    %237 = math.exp %236 : vector<4x32xf32>
    %cst_55 = arith.constant 1.000000e+00 : f32
    %238 = vector.broadcast %cst_55 : f32 to vector<4x32xf32>
    %239 = arith.addf %238, %237 : vector<4x32xf32>
    %240 = arith.divf %238, %239 : vector<4x32xf32>
    %241 = vector.extract_strided_slice %234 {offsets = [0, 32], sizes = [4, 32], strides = [1, 1]} : vector<4x128xf32> to vector<4x32xf32>
    %242 = arith.negf %241 : vector<4x32xf32>
    %243 = math.exp %242 : vector<4x32xf32>
    %cst_56 = arith.constant 1.000000e+00 : f32
    %244 = vector.broadcast %cst_56 : f32 to vector<4x32xf32>
    %245 = arith.addf %244, %243 : vector<4x32xf32>
    %246 = arith.divf %244, %245 : vector<4x32xf32>
    %247 = vector.extract_strided_slice %234 {offsets = [0, 64], sizes = [4, 32], strides = [1, 1]} : vector<4x128xf32> to vector<4x32xf32>
    %248 = math.tanh %247 : vector<4x32xf32>
    %249 = vector.extract_strided_slice %234 {offsets = [0, 96], sizes = [4, 32], strides = [1, 1]} : vector<4x128xf32> to vector<4x32xf32>
    %250 = arith.negf %249 : vector<4x32xf32>
    %251 = math.exp %250 : vector<4x32xf32>
    %cst_57 = arith.constant 1.000000e+00 : f32
    %252 = vector.broadcast %cst_57 : f32 to vector<4x32xf32>
    %253 = arith.addf %252, %251 : vector<4x32xf32>
    %254 = arith.divf %252, %253 : vector<4x32xf32>
    %255 = arith.mulf %246, %213 : vector<4x32xf32>
    %256 = arith.mulf %240, %248 : vector<4x32xf32>
    %257 = arith.addf %255, %256 : vector<4x32xf32>
    %258 = math.tanh %257 : vector<4x32xf32>
    %259 = arith.mulf %254, %258 : vector<4x32xf32>
    %cst_58 = arith.constant dense<0.000000e+00> : vector<4x1xf32>
    %260 = tpu.matmul %259, %7, %cst_58 {dimension_numbers = #tpu.dot_dimension_numbers<[1], [0], [0], [1], [0, 0, 1, 1], [], []>} : vector<4x32xf32>, vector<32x1xf32>, vector<4x1xf32> -> vector<4x1xf32>
    %261 = vector.broadcast %8 : f32 to vector<4x1xf32>
    %262 = arith.addf %260, %261 : vector<4x1xf32>
    %263 = arith.negf %262 : vector<4x1xf32>
    %264 = math.exp %263 : vector<4x1xf32>
    %cst_59 = arith.constant 1.000000e+00 : f32
    %265 = vector.broadcast %cst_59 : f32 to vector<4x1xf32>
    %266 = arith.addf %265, %264 : vector<4x1xf32>
    %267 = arith.divf %265, %266 : vector<4x1xf32>
    %cst_60 = arith.constant 9.900000e+01 : f32
    %268 = vector.broadcast %cst_60 : f32 to vector<4x1xf32>
    %269 = arith.mulf %267, %268 : vector<4x1xf32>
    %270 = vector.broadcast %c5_i32 : i32 to vector<4x8xi32>
    %271 = arith.cmpi eq, %9, %270 : vector<4x8xi32>
    %cst_61 = arith.constant 0.000000e+00 : f32
    %272 = vector.shape_cast %269 : vector<4x1xf32> to vector<4x1xf32>
    %273 = vector.broadcast %272 : vector<4x1xf32> to vector<4x8xf32>
    %274 = vector.broadcast %cst_61 : f32 to vector<4x8xf32>
    %275 = arith.select %271, %273, %274 : vector<4x8xi1>, vector<4x8xf32>
    %276 = arith.addf %232, %275 : vector<4x8xf32>
    %c6_i32 = arith.constant 6 : i32
    %cst_62 = arith.constant dense<0.000000e+00> : vector<4x128xf32>
    %277 = tpu.matmul %259, %6, %cst_62 {dimension_numbers = #tpu.dot_dimension_numbers<[1], [0], [0], [1], [0, 0, 1, 1], [], []>} : vector<4x32xf32>, vector<32x128xf32>, vector<4x128xf32> -> vector<4x128xf32>
    %278 = arith.addf %5, %277 : vector<4x128xf32>
    %279 = vector.extract_strided_slice %278 {offsets = [0, 0], sizes = [4, 32], strides = [1, 1]} : vector<4x128xf32> to vector<4x32xf32>
    %280 = arith.negf %279 : vector<4x32xf32>
    %281 = math.exp %280 : vector<4x32xf32>
    %cst_63 = arith.constant 1.000000e+00 : f32
    %282 = vector.broadcast %cst_63 : f32 to vector<4x32xf32>
    %283 = arith.addf %282, %281 : vector<4x32xf32>
    %284 = arith.divf %282, %283 : vector<4x32xf32>
    %285 = vector.extract_strided_slice %278 {offsets = [0, 32], sizes = [4, 32], strides = [1, 1]} : vector<4x128xf32> to vector<4x32xf32>
    %286 = arith.negf %285 : vector<4x32xf32>
    %287 = math.exp %286 : vector<4x32xf32>
    %cst_64 = arith.constant 1.000000e+00 : f32
    %288 = vector.broadcast %cst_64 : f32 to vector<4x32xf32>
    %289 = arith.addf %288, %287 : vector<4x32xf32>
    %290 = arith.divf %288, %289 : vector<4x32xf32>
    %291 = vector.extract_strided_slice %278 {offsets = [0, 64], sizes = [4, 32], strides = [1, 1]} : vector<4x128xf32> to vector<4x32xf32>
    %292 = math.tanh %291 : vector<4x32xf32>
    %293 = vector.extract_strided_slice %278 {offsets = [0, 96], sizes = [4, 32], strides = [1, 1]} : vector<4x128xf32> to vector<4x32xf32>
    %294 = arith.negf %293 : vector<4x32xf32>
    %295 = math.exp %294 : vector<4x32xf32>
    %cst_65 = arith.constant 1.000000e+00 : f32
    %296 = vector.broadcast %cst_65 : f32 to vector<4x32xf32>
    %297 = arith.addf %296, %295 : vector<4x32xf32>
    %298 = arith.divf %296, %297 : vector<4x32xf32>
    %299 = arith.mulf %290, %257 : vector<4x32xf32>
    %300 = arith.mulf %284, %292 : vector<4x32xf32>
    %301 = arith.addf %299, %300 : vector<4x32xf32>
    %302 = math.tanh %301 : vector<4x32xf32>
    %303 = arith.mulf %298, %302 : vector<4x32xf32>
    %cst_66 = arith.constant dense<0.000000e+00> : vector<4x1xf32>
    %304 = tpu.matmul %303, %7, %cst_66 {dimension_numbers = #tpu.dot_dimension_numbers<[1], [0], [0], [1], [0, 0, 1, 1], [], []>} : vector<4x32xf32>, vector<32x1xf32>, vector<4x1xf32> -> vector<4x1xf32>
    %305 = vector.broadcast %8 : f32 to vector<4x1xf32>
    %306 = arith.addf %304, %305 : vector<4x1xf32>
    %307 = arith.negf %306 : vector<4x1xf32>
    %308 = math.exp %307 : vector<4x1xf32>
    %cst_67 = arith.constant 1.000000e+00 : f32
    %309 = vector.broadcast %cst_67 : f32 to vector<4x1xf32>
    %310 = arith.addf %309, %308 : vector<4x1xf32>
    %311 = arith.divf %309, %310 : vector<4x1xf32>
    %cst_68 = arith.constant 9.900000e+01 : f32
    %312 = vector.broadcast %cst_68 : f32 to vector<4x1xf32>
    %313 = arith.mulf %311, %312 : vector<4x1xf32>
    %314 = vector.broadcast %c6_i32 : i32 to vector<4x8xi32>
    %315 = arith.cmpi eq, %9, %314 : vector<4x8xi32>
    %cst_69 = arith.constant 0.000000e+00 : f32
    %316 = vector.shape_cast %313 : vector<4x1xf32> to vector<4x1xf32>
    %317 = vector.broadcast %316 : vector<4x1xf32> to vector<4x8xf32>
    %318 = vector.broadcast %cst_69 : f32 to vector<4x8xf32>
    %319 = arith.select %315, %317, %318 : vector<4x8xi1>, vector<4x8xf32>
    %320 = arith.addf %276, %319 : vector<4x8xf32>
    %c7_i32 = arith.constant 7 : i32
    %cst_70 = arith.constant dense<0.000000e+00> : vector<4x128xf32>
    %321 = tpu.matmul %303, %6, %cst_70 {dimension_numbers = #tpu.dot_dimension_numbers<[1], [0], [0], [1], [0, 0, 1, 1], [], []>} : vector<4x32xf32>, vector<32x128xf32>, vector<4x128xf32> -> vector<4x128xf32>
    %322 = arith.addf %5, %321 : vector<4x128xf32>
    %323 = vector.extract_strided_slice %322 {offsets = [0, 0], sizes = [4, 32], strides = [1, 1]} : vector<4x128xf32> to vector<4x32xf32>
    %324 = arith.negf %323 : vector<4x32xf32>
    %325 = math.exp %324 : vector<4x32xf32>
    %cst_71 = arith.constant 1.000000e+00 : f32
    %326 = vector.broadcast %cst_71 : f32 to vector<4x32xf32>
    %327 = arith.addf %326, %325 : vector<4x32xf32>
    %328 = arith.divf %326, %327 : vector<4x32xf32>
    %329 = vector.extract_strided_slice %322 {offsets = [0, 32], sizes = [4, 32], strides = [1, 1]} : vector<4x128xf32> to vector<4x32xf32>
    %330 = arith.negf %329 : vector<4x32xf32>
    %331 = math.exp %330 : vector<4x32xf32>
    %cst_72 = arith.constant 1.000000e+00 : f32
    %332 = vector.broadcast %cst_72 : f32 to vector<4x32xf32>
    %333 = arith.addf %332, %331 : vector<4x32xf32>
    %334 = arith.divf %332, %333 : vector<4x32xf32>
    %335 = vector.extract_strided_slice %322 {offsets = [0, 64], sizes = [4, 32], strides = [1, 1]} : vector<4x128xf32> to vector<4x32xf32>
    %336 = math.tanh %335 : vector<4x32xf32>
    %337 = vector.extract_strided_slice %322 {offsets = [0, 96], sizes = [4, 32], strides = [1, 1]} : vector<4x128xf32> to vector<4x32xf32>
    %338 = arith.negf %337 : vector<4x32xf32>
    %339 = math.exp %338 : vector<4x32xf32>
    %cst_73 = arith.constant 1.000000e+00 : f32
    %340 = vector.broadcast %cst_73 : f32 to vector<4x32xf32>
    %341 = arith.addf %340, %339 : vector<4x32xf32>
    %342 = arith.divf %340, %341 : vector<4x32xf32>
    %343 = arith.mulf %334, %301 : vector<4x32xf32>
    %344 = arith.mulf %328, %336 : vector<4x32xf32>
    %345 = arith.addf %343, %344 : vector<4x32xf32>
    %346 = math.tanh %345 : vector<4x32xf32>
    %347 = arith.mulf %342, %346 : vector<4x32xf32>
    %cst_74 = arith.constant dense<0.000000e+00> : vector<4x1xf32>
    %348 = tpu.matmul %347, %7, %cst_74 {dimension_numbers = #tpu.dot_dimension_numbers<[1], [0], [0], [1], [0, 0, 1, 1], [], []>} : vector<4x32xf32>, vector<32x1xf32>, vector<4x1xf32> -> vector<4x1xf32>
    %349 = vector.broadcast %8 : f32 to vector<4x1xf32>
    %350 = arith.addf %348, %349 : vector<4x1xf32>
    %351 = arith.negf %350 : vector<4x1xf32>
    %352 = math.exp %351 : vector<4x1xf32>
    %cst_75 = arith.constant 1.000000e+00 : f32
    %353 = vector.broadcast %cst_75 : f32 to vector<4x1xf32>
    %354 = arith.addf %353, %352 : vector<4x1xf32>
    %355 = arith.divf %353, %354 : vector<4x1xf32>
    %cst_76 = arith.constant 9.900000e+01 : f32
    %356 = vector.broadcast %cst_76 : f32 to vector<4x1xf32>
    %357 = arith.mulf %355, %356 : vector<4x1xf32>
    %358 = vector.broadcast %c7_i32 : i32 to vector<4x8xi32>
    %359 = arith.cmpi eq, %9, %358 : vector<4x8xi32>
    %cst_77 = arith.constant 0.000000e+00 : f32
    %360 = vector.shape_cast %357 : vector<4x1xf32> to vector<4x1xf32>
    %361 = vector.broadcast %360 : vector<4x1xf32> to vector<4x8xf32>
    %362 = vector.broadcast %cst_77 : f32 to vector<4x8xf32>
    %363 = arith.select %359, %361, %362 : vector<4x8xi1>, vector<4x8xf32>
    %364 = arith.addf %320, %363 : vector<4x8xf32>
    %c8_i32 = arith.constant 8 : i32
    %c0_78 = arith.constant 0 : index
    %c0_79 = arith.constant 0 : index
    %365 = vector.load %arg7[%c0_78, %c0_79] : memref<4x8xf32, #tpu.memory_space<vmem>>, vector<4x8xf32>
    tpu.vector_store %arg7[%c0_78, %c0_79], %364 {strides = array<i32>} : memref<4x8xf32, #tpu.memory_space<vmem>>, vector<4x8xf32>,
    return
  }
  func.func @transform_0(%arg0: i32) -> (i32, i32) {
    %c0_i32 = arith.constant 0 : i32
    %c0_i32_0 = arith.constant 0 : i32
    %c0_i32_1 = arith.constant 0 : i32
    return %c0_i32, %c0_i32_0 : i32, i32
  }
  func.func @transform_1(%arg0: i32) -> (i32, i32) {
    %c0_i32 = arith.constant 0 : i32
    %c0_i32_0 = arith.constant 0 : i32
    %c0_i32_1 = arith.constant 0 : i32
    return %c0_i32, %c0_i32_0 : i32, i32
  }
  func.func @transform_2(%arg0: i32) -> (i32, i32) {
    %c0_i32 = arith.constant 0 : i32
    %c0_i32_0 = arith.constant 0 : i32
    %c0_i32_1 = arith.constant 0 : i32
    return %c0_i32, %c0_i32_0 : i32, i32
  }
  func.func @transform_3(%arg0: i32) -> (i32, i32) {
    %c0_i32 = arith.constant 0 : i32
    %c0_i32_0 = arith.constant 0 : i32
    %c0_i32_1 = arith.constant 0 : i32
    return %c0_i32, %c0_i32_0 : i32, i32
  }
  func.func @transform_4(%arg0: i32) -> (i32, i32) {
    %c0_i32 = arith.constant 0 : i32
    %c0_i32_0 = arith.constant 0 : i32
    %c0_i32_1 = arith.constant 0 : i32
    return %c0_i32, %c0_i32_0 : i32, i32
  }
  func.func @transform_5(%arg0: i32) -> (i32, i32) {
    %c0_i32 = arith.constant 0 : i32
    %c0_i32_0 = arith.constant 0 : i32
    %c0_i32_1 = arith.constant 0 : i32
    return %c0_i32, %c0_i32_0 : i32, i32
  }
  func.func @transform_6(%arg0: i32) -> (i32, i32) {
    %c0_i32 = arith.constant 0 : i32
    %c0_i32_0 = arith.constant 0 : i32
    %c0_i32_1 = arith.constant 0 : i32
    return %c0_i32, %c0_i32_0 : i32, i32
  }
}

</mosaic_0001>

<bundles_post_ra>
// kernel: tpu_custom_call.1
= control target key start
LH: loop header
LB: loop body
LE: loop exit
PB: predicated region body
PF: predicated region fallthrough
CT: control target
= control target key end

     0   :  { %12 = vsyncpa [#allocation4], 0  ;;  %s1468_s0 = inlined_call_operand.<no memory space> [shape: f32[1,1], index: 0, kind: input, shape index: {}]   ;;  %s1469_s1 = inlined_call_operand.hbm [shape: f32[4,8], index: 1, kind: input, shape index: {}]   ;;  %s1470_s2 = inlined_call_operand.hbm [shape: f32[8,128], index: 2, kind: input, shape index: {}]   ;;  %s1471_s3 = inlined_call_operand.vmem [shape: f32[32,128], index: 3, kind: input, shape index: {}]   ;;  %s1472_s4 = inlined_call_operand.vmem [shape: f32[1,128], index: 4, kind: input, shape index: {}]   ;;  %s1473_s5 = inlined_call_operand.vmem [shape: f32[32,1], index: 5, kind: input, shape index: {}]   ;;  %s1474_s6 = inlined_call_operand.hbm [shape: f32[4,8], index: 6, kind: output, shape index: {}]  }
   0x1   :  { %13 = vsyncpa [#allocation7], 0 }
   0x2   :  { %14 = vsyncpa [#allocation5], 0  ;;  %s22_s23 = sshll.u32 %s1469_s1, 4  ;;  %s1224_s24 = smov [#allocation3]   ;;  %s23_s23 = int_to_ptr.hbm [resolvable:$true] %s22_s23 }
   0x3   :  { %s24_s25 = sshll.u32 %s1224_s24, 4  ;;  %s33_s28 = sshll.u32 %s1470_s2, 4  ;;  %s25_s25 = int_to_ptr.vmem [resolvable:$true] %s24_s25  ;;  %s34_s28 = int_to_ptr.hbm [resolvable:$true] %s33_s28 }
   0x4   :  { %27 = dma.hbm_to_vmem [thread:$0]  %s23_s23, 64, %s25_s25, [#allocation4]  }
   0x5   :  { %s1225_s29 = smov [#allocation6]  }
   0x6   :  { %s35_s30 = sshll.u32 %s1225_s29, 4  ;;  %s36_s30 = int_to_ptr.vmem [resolvable:$true] %s35_s30 }
   0x7   :  { %38 = dma.hbm_to_vmem [thread:$0]  %s34_s28, 128, %s36_s30, [#allocation7]  }
   0x8   :  { %1218 = dma.done.wait [#allocation4], 64  }
   0x9   :  { %1219 = vsyncadd [#allocation4], 4294967232 }
   0xa   :  { %1220 = dma.done.wait [#allocation7], 128  }
   0xb   :  { %1221 = vsyncadd [#allocation7], 4294967168  ;;  %vm59_vm0 = vcmask 64512   ;;  %v1275_v0 = vld [vmem:[%s1471_s3 + $0x18] sm:$0xff]  ;;  %v1280_v1 = vld [vmem:[%s1471_s3 + $0x10] sm:$0xff]  ;;  %v1226_v6 = vmov 0.0  }
   0xc   :  { %v54_v2 = vld [vmem:[#allocation6] sm:$0xff]  ;;  %110 = vmatpush.msra.mxu1 %v1275_v0  ;;  %v53_v3 = vld [vmem:[#allocation3] sm:$0xf]  ;;  %222 = vmatpush.msra.mxu3 %v1275_v0  ;;  %s1227_s14 = smov 64   ;;  %v1327_v32 = vld [vmem:[%s1473_s5 + $0x18] sm:$0xff]  ;;  %vm94_vm5 = vcmask 261120  }
   0xd   :  { %78 = vmatpush.msra.mxu0 %v54_v2  ;;  %v1286_v4 = vld [vmem:[%s1471_s3 + $0x8] sm:$0xff]  ;;  %v1293_v5 = vld [vmem:[%s1471_s3] sm:$0xff]  ;;  %v1332_v33 = vld [vmem:[%s1473_s5 + $0x10] sm:$0xff]  ;;  %174 = vmatpush.msra.mxu2 %v1327_v32  ;;  %s996_s27 = sshll.u32 %s1474_s6, 4  ;;  %s997_s27 = int_to_ptr.hbm [resolvable:$true] %s996_s27 }
   0xe   :  { %1007 = vmatmul.msk.f32.vlgmr.msra.gmra.mxu0 %vm59_vm0, %v53_v3  ;;  %111 = vmatpush.msra.mxu1 %v1280_v1  ;;  %v1049_v7 = vld [vmem:[%s1472_s4] ss:$0 sm:$0xff]  ;;  %s1228_s4 = smov 32   ;;  %v1339_v34 = vld [vmem:[%s1473_s5 + $0x8] sm:$0xff] }
   0xf   :  { %223 = vmatpush.msra.mxu3 %v1280_v1  ;;  %285 = vmatpush.msrb.mxu0 %v1327_v32  ;;  %v1346_v35 = vld [vmem:[%s1473_s5] sm:$0xff] }
  0x10   :  { %112 = vmatpush.msra.mxu1 %v1286_v4  ;;  %175 = vmatpush.msra.mxu2 %v1332_v33 }
  0x11   :  { %224 = vmatpush.msra.mxu3 %v1286_v4  ;;  %286 = vmatpush.msrb.mxu0 %v1332_v33 }
  0x12   :  { %113 = vmatpush.msra.mxu1 %v1293_v5  ;;  %176 = vmatpush.msra.mxu2 %v1339_v34 }
  0x13   :  { %114 = vmatmul.f32.vlgmr.msra.gmra.mxu1 %v1226_v6  ;;  %225 = vmatpush.msra.mxu3 %v1293_v5 }
  0x14   :  { %333 = vmatpush.msrb.mxu1 %v1275_v0  ;;  %287 = vmatpush.msrb.mxu0 %v1339_v34 }
  0x15   :  { %444 = vmatpush.msrb.mxu3 %v1275_v0  ;;  %177 = vmatpush.msra.mxu2 %v1346_v35 }
  0x16   :  { %334 = vmatpush.msrb.mxu1 %v1280_v1  ;;  %288 = vmatpush.msrb.mxu0 %v1346_v35 }
  0x17   :  { %445 = vmatpush.msrb.mxu3 %v1280_v1  ;;  %396 = vmatpush.msrb.mxu2 %v1327_v32 }
  0x18   :  { %335 = vmatpush.msrb.mxu1 %v1286_v4  ;;  %507 = vmatpush.msra.mxu0 %v1327_v32 }
  0x19   :  { %446 = vmatpush.msrb.mxu3 %v1286_v4  ;;  %397 = vmatpush.msrb.mxu2 %v1332_v33 }
  0x1a   :  { %336 = vmatpush.msrb.mxu1 %v1293_v5  ;;  %508 = vmatpush.msra.mxu0 %v1332_v33 }
  0x1b   :  { %447 = vmatpush.msrb.mxu3 %v1293_v5  ;;  %398 = vmatpush.msrb.mxu2 %v1339_v34 }
  0x1c   :  { %555 = vmatpush.msra.mxu1 %v1275_v0  ;;  %509 = vmatpush.msra.mxu0 %v1339_v34 }
  0x1d   :  { %399 = vmatpush.msrb.mxu2 %v1346_v35 }
  0x1e   :  { %556 = vmatpush.msra.mxu1 %v1280_v1  ;;  %510 = vmatpush.msra.mxu0 %v1346_v35 }
  0x20   :  { %557 = vmatpush.msra.mxu1 %v1286_v4 }
  0x22   :  { %558 = vmatpush.msra.mxu1 %v1293_v5 }
  0x8b   :  { %v80_v8 = vpop.f32.mrf.mxu0 }
  0x8c   :  { %v1315_v9 = vadd.f32 %v1049_v7, %v80_v8 }
  0x90   :  { %v115_v10 = vpop.f32.mrf.mxu1 }
  0x91   :  { %v118_v11 = vadd.f32 %v115_v10, %v1315_v9 }
  0x93   :  { %1050 = vtanh.f32 %v118_v11  ;;  %v1008_v13 = vmul.f32 -1.442695, %v118_v11 }
  0x95   :  { %1052 = vpow2.f32 %v1008_v13 }
  0x99   :  { %v1051_v12 = vpop.eup %1050 }
  0x9a   :  { %141 = vrot.lane.b32.xlu0 %v1051_v12, %s1227_s14 }
  0x9b   :  { %v1053_v14 = vpop.eup %1052 }
  0x9c   :  { %v122_v15 = vadd.f32 1.0, %v1053_v14 }
  0x9e   :  { %1054 = vrcp.f32 %v122_v15  ;;  %v134_v21 = vand.u32 2147483648, %v122_v15  ;;  %vm128_vm2 = vweird.f32 %v122_v15  ;;  %v132_v22 = vand.u32 2147483647, %v122_v15 }
  0xa0   :  { %v135_v24 = vor.u32 1.1754944e-38, %v134_v21  ;;  %vm133_vm4 = vcmp.eq.f32.partialorder %v132_v22, 8.507059e+37 }
  0xa4   :  { %v1055_v16 = vpop.eup %1054 }
  0xa5   :  { %v124_v17 = vmul.f32 %v1055_v16, %v122_v15  ;;  %vm129_vm1 = vweird.f32 %v1055_v16 }
  0xa6   :  { %vm130_vm3 = vmor %vm128_vm2, %vm129_vm1 }
  0xa7   :  { %v125_v18 = vsub.f32 1.0, %v124_v17 }
  0xa9   :  { %v126_v19 = vmul.f32 %v1055_v16, %v125_v18 }
  0xab   :  { %v127_v20 = vadd.f32 %v1055_v16, %v126_v19 }
  0xad   :  { %v131_v23 = vsel %vm130_vm3, %v1055_v16, %v127_v20 }
  0xae   :  { %v136_v26 = vsel %vm133_vm4, %v135_v24, %v131_v23 }
  0xaf   :  { %v139_v28 = vmul.f32 0.0, %v136_v26 }
 0x10c   :  { %v142_v25 = vpop.permute.xlu0 %141 }
 0x10d   :  { %v144_v27 = vmul.f32 %v142_v25, %v136_v26 }
 0x10f   :  { %146 = vrot.lane.b32.xlu0 %v144_v27, %s1228_s4 }
 0x181   :  { %v147_v29 = vpop.permute.xlu0 %146 }
 0x182   :  { %v1320_v30 = vadd.f32 %v147_v29, %v139_v28 }
 0x184   :  { %1056 = vtanh.f32 %v1320_v30 }
 0x18a   :  { %v1057_v31 = vpop.eup %1056 }
 0x18b   :  { %152 = vrot.lane.b32.xlu1 %v1057_v31, %s1227_s14 }
 0x1fd   :  { %v153_v36 = vpop.permute.xlu1 %152 }
 0x1fe   :  { %v155_v37 = vmul.f32 %v153_v36, %v136_v26 }
 0x200   :  { %158 = vrot.lane.b32.xlu1 %v155_v37, %s1228_s4 }
 0x272   :  { %v159_v38 = vpop.permute.xlu1 %158 }
 0x273   :  { %1009 = vmatmul.msk.f32.vlgmr.msra.gmra.mxu2 %vm94_vm5, %v159_v38  ;;  %1011 = vmatmul.msk.f32.vlgmr.msra.gmra.mxu3 %vm94_vm5, %v159_v38 }
 0x274   :  { %666 = vmatpush.msra.mxu3 %v1275_v0  ;;  %618 = vmatpush.msra.mxu2 %v1327_v32 }
 0x276   :  { %667 = vmatpush.msra.mxu3 %v1280_v1  ;;  %619 = vmatpush.msra.mxu2 %v1332_v33 }
 0x278   :  { %668 = vmatpush.msra.mxu3 %v1286_v4  ;;  %620 = vmatpush.msra.mxu2 %v1339_v34 }
 0x27a   :  { %669 = vmatpush.msra.mxu3 %v1293_v5  ;;  %621 = vmatpush.msra.mxu2 %v1346_v35 }
 0x2f6   :  { %v227_v39 = vpop.f32.mrf.mxu3 }
 0x2f7   :  { %v230_v40 = vadd.f32 %v227_v39, %v1315_v9 }
 0x2f9   :  { %1058 = vtanh.f32 %v230_v40  ;;  %v1012_v42 = vmul.f32 -1.442695, %v230_v40 }
 0x2fb   :  { %1060 = vpow2.f32 %v1012_v42 }
 0x2ff   :  { %v1059_v41 = vpop.eup %1058 }
 0x300   :  { %253 = vrot.lane.b32.xlu2 %v1059_v41, %s1227_s14 }
 0x301   :  { %v1061_v43 = vpop.eup %1060 }
 0x302   :  { %v234_v44 = vadd.f32 1.0, %v1061_v43 }
 0x304   :  { %1062 = vrcp.f32 %v234_v44  ;;  %v246_v50 = vand.u32 2147483648, %v234_v44  ;;  %vm240_vm7 = vweird.f32 %v234_v44  ;;  %v244_v51 = vand.u32 2147483647, %v234_v44 }
 0x306   :  { %v247_v53 = vor.u32 1.1754944e-38, %v246_v50  ;;  %vm245_vm9 = vcmp.eq.f32.partialorder %v244_v51, 8.507059e+37 }
 0x30a   :  { %v1063_v45 = vpop.eup %1062 }
 0x30b   :  { %v236_v46 = vmul.f32 %v1063_v45, %v234_v44  ;;  %vm241_vm6 = vweird.f32 %v1063_v45 }
 0x30c   :  { %vm242_vm8 = vmor %vm240_vm7, %vm241_vm6 }
 0x30d   :  { %v237_v47 = vsub.f32 1.0, %v236_v46 }
 0x30f   :  { %v238_v48 = vmul.f32 %v1063_v45, %v237_v47 }
 0x311   :  { %v239_v49 = vadd.f32 %v1063_v45, %v238_v48 }
 0x313   :  { %v243_v52 = vsel %vm242_vm8, %v1063_v45, %v239_v49 }
 0x314   :  { %v248_v55 = vsel %vm245_vm9, %v247_v53, %v243_v52 }
 0x315   :  { %v251_v57 = vmul.f32 %v248_v55, %v1320_v30 }
 0x35a   :  { %v254_v54 = vpop.permute.xlu2 %253 }
 0x35b   :  { %v256_v56 = vmul.f32 %v254_v54, %v248_v55 }
 0x35d   :  { %258 = vrot.lane.b32.xlu2 %v256_v56, %s1228_s4 }
 0x3b7   :  { %v259_v58 = vpop.permute.xlu2 %258 }
 0x3b8   :  { %v261_v59 = vadd.f32 %v259_v58, %v251_v57 }
 0x3ba   :  { %1064 = vtanh.f32 %v261_v59 }
 0x3c0   :  { %v1065_v60 = vpop.eup %1064 }
 0x3c1   :  { %264 = vrot.lane.b32.xlu0 %v1065_v60, %s1227_s14 }
 0x433   :  { %v265_v61 = vpop.permute.xlu0 %264 }
 0x434   :  { %v267_v62 = vmul.f32 %v265_v61, %v248_v55 }
 0x436   :  { %269 = vrot.lane.b32.xlu1 %v267_v62, %s1228_s4 }
 0x4a8   :  { %v270_v63 = vpop.permute.xlu1 %269 }
 0x4a9   :  { %1013 = vmatmul.msk.f32.vlgmr.msrb.gmra.mxu0 %vm94_vm5, %v270_v63  ;;  %1015 = vmatmul.msk.f32.vlgmr.msrb.gmra.mxu1 %vm94_vm5, %v270_v63 }
 0x4aa   :  { %777 = vmatpush.msrb.mxu1 %v1275_v0  ;;  %729 = vmatpush.msrb.mxu0 %v1327_v32 }
 0x4ac   :  { %778 = vmatpush.msrb.mxu1 %v1280_v1  ;;  %730 = vmatpush.msrb.mxu0 %v1332_v33 }
 0x4ae   :  { %779 = vmatpush.msrb.mxu1 %v1286_v4  ;;  %731 = vmatpush.msrb.mxu0 %v1339_v34 }
 0x4b0   :  { %780 = vmatpush.msrb.mxu1 %v1293_v5  ;;  %732 = vmatpush.msrb.mxu0 %v1346_v35 }
 0x526   :  { %v338_v2 = vpop.f32.mrf.mxu1 }
 0x527   :  { %v341_v3 = vadd.f32 %v338_v2, %v1315_v9 }
 0x529   :  { %1066 = vtanh.f32 %v341_v3  ;;  %v1016_v7 = vmul.f32 -1.442695, %v341_v3 }
 0x52b   :  { %1068 = vpow2.f32 %v1016_v7 }
 0x52f   :  { %v1067_v6 = vpop.eup %1066 }
 0x530   :  { %364 = vrot.lane.b32.xlu2 %v1067_v6, %s1227_s14 }
 0x531   :  { %v1069_v8 = vpop.eup %1068 }
 0x532   :  { %v345_v10 = vadd.f32 1.0, %v1069_v8 }
 0x534   :  { %1070 = vrcp.f32 %v345_v10  ;;  %v357_v16 = vand.u32 2147483648, %v345_v10  ;;  %vm351_vm11 = vweird.f32 %v345_v10  ;;  %v355_v17 = vand.u32 2147483647, %v345_v10 }
 0x536   :  { %v358_v19 = vor.u32 1.1754944e-38, %v357_v16  ;;  %vm356_vm13 = vcmp.eq.f32.partialorder %v355_v17, 8.507059e+37 }
 0x53a   :  { %v1071_v11 = vpop.eup %1070 }
 0x53b   :  { %v347_v12 = vmul.f32 %v1071_v11, %v345_v10  ;;  %vm352_vm10 = vweird.f32 %v1071_v11 }
 0x53c   :  { %vm353_vm12 = vmor %vm351_vm11, %vm352_vm10 }
 0x53d   :  { %v348_v13 = vsub.f32 1.0, %v347_v12 }
 0x53f   :  { %v349_v14 = vmul.f32 %v1071_v11, %v348_v13 }
 0x541   :  { %v350_v15 = vadd.f32 %v1071_v11, %v349_v14 }
 0x543   :  { %v354_v18 = vsel %vm353_vm12, %v1071_v11, %v350_v15 }
 0x544   :  { %v359_v21 = vsel %vm356_vm13, %v358_v19, %v354_v18 }
 0x545   :  { %v362_v23 = vmul.f32 %v359_v21, %v261_v59 }
 0x58a   :  { %v365_v20 = vpop.permute.xlu2 %364 }
 0x58b   :  { %v367_v22 = vmul.f32 %v365_v20, %v359_v21 }
 0x58d   :  { %369 = vrot.lane.b32.xlu0 %v367_v22, %s1228_s4 }
 0x5ff   :  { %v370_v24 = vpop.permute.xlu0 %369 }
 0x600   :  { %v372_v25 = vadd.f32 %v370_v24, %v362_v23 }
 0x602   :  { %1072 = vtanh.f32 %v372_v25 }
 0x608   :  { %v1073_v26 = vpop.eup %1072 }
 0x609   :  { %375 = vrot.lane.b32.xlu1 %v1073_v26, %s1227_s14 }
 0x67b   :  { %v376_v27 = vpop.permute.xlu1 %375 }
 0x67c   :  { %v378_v28 = vmul.f32 %v376_v27, %v359_v21 }
 0x67e   :  { %380 = vrot.lane.b32.xlu2 %v378_v28, %s1228_s4 }
 0x6d8   :  { %v381_v29 = vpop.permute.xlu2 %380 }
 0x6d9   :  { %1017 = vmatmul.msk.f32.vlgmr.msrb.gmra.mxu2 %vm94_vm5, %v381_v29  ;;  %1019 = vmatmul.msk.f32.vlgmr.msrb.gmra.mxu3 %vm94_vm5, %v381_v29 }
 0x6da   :  { %888 = vmatpush.msrb.mxu3 %v1275_v0  ;;  %840 = vmatpush.msrb.mxu2 %v1327_v32 }
 0x6dc   :  { %889 = vmatpush.msrb.mxu3 %v1280_v1  ;;  %841 = vmatpush.msrb.mxu2 %v1332_v33 }
 0x6de   :  { %890 = vmatpush.msrb.mxu3 %v1286_v4  ;;  %842 = vmatpush.msrb.mxu2 %v1339_v34 }
 0x6e0   :  { %891 = vmatpush.msrb.mxu3 %v1293_v5  ;;  %843 = vmatpush.msrb.mxu2 %v1346_v35 }
 0x75c   :  { %v449_v30 = vpop.f32.mrf.mxu3 }
 0x75d   :  { %v452_v31 = vadd.f32 %v449_v30, %v1315_v9 }
 0x75f   :  { %1074 = vtanh.f32 %v452_v31  ;;  %v1020_v0 = vmul.f32 -1.442695, %v452_v31 }
 0x761   :  { %1076 = vpow2.f32 %v1020_v0 }
 0x765   :  { %v1075_v36 = vpop.eup %1074 }
 0x766   :  { %475 = vrot.lane.b32.xlu0 %v1075_v36, %s1227_s14 }
 0x767   :  { %v1077_v1 = vpop.eup %1076 }
 0x768   :  { %v456_v37 = vadd.f32 1.0, %v1077_v1 }
 0x76a   :  { %1078 = vrcp.f32 %v456_v37  ;;  %v468_v5 = vand.u32 2147483648, %v456_v37  ;;  %vm462_vm15 = vweird.f32 %v456_v37  ;;  %v466_v42 = vand.u32 2147483647, %v456_v37 }
 0x76c   :  { %v469_v44 = vor.u32 1.1754944e-38, %v468_v5  ;;  %vm467_vm1 = vcmp.eq.f32.partialorder %v466_v42, 8.507059e+37 }
 0x770   :  { %v1079_v38 = vpop.eup %1078 }
 0x771   :  { %v458_v4 = vmul.f32 %v1079_v38, %v456_v37  ;;  %vm463_vm14 = vweird.f32 %v1079_v38 }
 0x772   :  { %vm464_vm0 = vmor %vm462_vm15, %vm463_vm14 }
 0x773   :  { %v459_v39 = vsub.f32 1.0, %v458_v4 }
 0x775   :  { %v460_v40 = vmul.f32 %v1079_v38, %v459_v39 }
 0x777   :  { %v461_v41 = vadd.f32 %v1079_v38, %v460_v40 }
 0x779   :  { %v465_v43 = vsel %vm464_vm0, %v1079_v38, %v461_v41 }
 0x77a   :  { %v470_v46 = vsel %vm467_vm1, %v469_v44, %v465_v43 }
 0x77b   :  { %v473_v48 = vmul.f32 %v470_v46, %v372_v25 }
 0x7d8   :  { %v476_v45 = vpop.permute.xlu0 %475 }
 0x7d9   :  { %v478_v47 = vmul.f32 %v476_v45, %v470_v46 }
 0x7db   :  { %480 = vrot.lane.b32.xlu1 %v478_v47, %s1228_s4 }
 0x84d   :  { %v481_v49 = vpop.permute.xlu1 %480 }
 0x84e   :  { %v483_v50 = vadd.f32 %v481_v49, %v473_v48 }
 0x850   :  { %1080 = vtanh.f32 %v483_v50 }
 0x856   :  { %v1081_v51 = vpop.eup %1080 }
 0x857   :  { %486 = vrot.lane.b32.xlu2 %v1081_v51, %s1227_s14 }
 0x8b1   :  { %v487_v52 = vpop.permute.xlu2 %486 }
 0x8b2   :  { %v489_v53 = vmul.f32 %v487_v52, %v470_v46 }
 0x8b4   :  { %491 = vrot.lane.b32.xlu0 %v489_v53, %s1228_s4 }
 0x926   :  { %v492_v54 = vpop.permute.xlu0 %491 }
 0x927   :  { %1021 = vmatmul.msk.f32.vlgmr.msra.gmra.mxu0 %vm94_vm5, %v492_v54  ;;  %1023 = vmatmul.msk.f32.vlgmr.msra.gmra.mxu1 %vm94_vm5, %v492_v54 }
 0x928   :  { %951 = vmatpush.msra.mxu0 %v1327_v32 }
 0x92a   :  { %952 = vmatpush.msra.mxu0 %v1332_v33 }
 0x92c   :  { %953 = vmatpush.msra.mxu0 %v1339_v34 }
 0x92e   :  { %954 = vmatpush.msra.mxu0 %v1346_v35 }
 0x9a4   :  { %v560_v55 = vpop.f32.mrf.mxu1 }
 0x9a5   :  { %v563_v56 = vadd.f32 %v560_v55, %v1315_v9 }
 0x9a7   :  { %1082 = vtanh.f32 %v563_v56  ;;  %v1024_v58 = vmul.f32 -1.442695, %v563_v56 }
 0x9a9   :  { %1084 = vpow2.f32 %v1024_v58 }
 0x9ad   :  { %v1083_v57 = vpop.eup %1082 }
 0x9ae   :  { %586 = vrot.lane.b32.xlu1 %v1083_v57, %s1227_s14 }
 0x9af   :  { %v1085_v59 = vpop.eup %1084 }
 0x9b0   :  { %v567_v60 = vadd.f32 1.0, %v1085_v59 }
 0x9b2   :  { %1086 = vrcp.f32 %v567_v60  ;;  %v579_v34 = vand.u32 2147483648, %v567_v60  ;;  %vm573_vm3 = vweird.f32 %v567_v60  ;;  %v577_v35 = vand.u32 2147483647, %v567_v60 }
 0x9b4   :  { %v580_v3 = vor.u32 1.1754944e-38, %v579_v34  ;;  %vm578_vm6 = vcmp.eq.f32.partialorder %v577_v35, 8.507059e+37 }
 0x9b8   :  { %v1087_v61 = vpop.eup %1086 }
 0x9b9   :  { %v569_v32 = vmul.f32 %v1087_v61, %v567_v60  ;;  %vm574_vm2 = vweird.f32 %v1087_v61 }
 0x9ba   :  { %vm575_vm4 = vmor %vm573_vm3, %vm574_vm2 }
 0x9bb   :  { %v570_v62 = vsub.f32 1.0, %v569_v32 }
 0x9bd   :  { %v571_v33 = vmul.f32 %v1087_v61, %v570_v62 }
 0x9bf   :  { %v572_v63 = vadd.f32 %v1087_v61, %v571_v33 }
 0x9c1   :  { %v576_v2 = vsel %vm575_vm4, %v1087_v61, %v572_v63 }
 0x9c2   :  { %v581_v7 = vsel %vm578_vm6, %v580_v3, %v576_v2 }
 0x9c3   :  { %v584_v10 = vmul.f32 %v581_v7, %v483_v50 }
 0xa20   :  { %v587_v6 = vpop.permute.xlu1 %586 }
 0xa21   :  { %v589_v8 = vmul.f32 %v587_v6, %v581_v7  ;;  %v1442_v6 = vstv %s1468_s0  ;;  %s1230_s0 = smov [#allocation8]  }
 0xa22   :  { %s994_s24 = sshll.u32 %s1230_s0, 4  ;;  %s995_s24 = int_to_ptr.vmem [resolvable:$true] %s994_s24 }
 0xa23   :  { %591 = vrot.lane.b32.xlu2 %v589_v8, %s1228_s4  ;;  %v1444_v8 = vpop.f32.mrf.mxu0 }
 0xa7d   :  { %v592_v11 = vpop.permute.xlu2 %591 }
 0xa7e   :  { %v594_v12 = vadd.f32 %v592_v11, %v584_v10 }
 0xa80   :  { %1088 = vtanh.f32 %v594_v12 }
 0xa86   :  { %v1089_v13 = vpop.eup %1088 }
 0xa87   :  { %597 = vrot.lane.b32.xlu0 %v1089_v13, %s1227_s14  ;;  %v512_v13 = vpop.f32.mrf.mxu0 }
 0xaf9   :  { %v598_v14 = vpop.permute.xlu0 %597 }
 0xafa   :  { %v600_v15 = vmul.f32 %v598_v14, %v581_v7  ;;  %v179_v7 = vpop.f32.mrf.mxu2 }
 0xafb   :  { %v180_v11 = vadd.f32 %v179_v7, %v1442_v6 }
 0xafc   :  { %602 = vrot.lane.b32.xlu1 %v600_v15, %s1228_s4 }
 0xb6e   :  { %v603_v16 = vpop.permute.xlu1 %602 }
 0xb6f   :  { %1025 = vmatmul.msk.f32.vlgmr.msra.gmra.mxu2 %vm94_vm5, %v603_v16  ;;  %1027 = vmatmul.msk.f32.vlgmr.msra.gmra.mxu3 %vm94_vm5, %v603_v16 }
 0xbf2   :  { %v671_v17 = vpop.f32.mrf.mxu3 }
 0xbf3   :  { %v674_v18 = vadd.f32 %v671_v17, %v1315_v9 }
 0xbf5   :  { %1090 = vtanh.f32 %v674_v18  ;;  %v1028_v20 = vmul.f32 -1.442695, %v674_v18 }
 0xbf7   :  { %1092 = vpow2.f32 %v1028_v20 }
 0xbfb   :  { %v1091_v19 = vpop.eup %1090 }
 0xbfc   :  { %697 = vrot.lane.b32.xlu2 %v1091_v19, %s1227_s14  ;;  %v1229_v19 = vmov 0  }
 0xbfd   :  { %v1093_v21 = vpop.eup %1092  ;;  %1046 = vset.pattern.permute.xlu2 %v1229_v19  ;;  %1047 = vset.pattern.permute.xlu0 %v1229_v19 }
 0xbfe   :  { %v678_v22 = vadd.f32 1.0, %v1093_v21  ;;  %1048 = vset.pattern.permute.xlu1 %v1229_v19 }
 0xc00   :  { %1094 = vrcp.f32 %v678_v22  ;;  %v690_v28 = vand.u32 2147483648, %v678_v22  ;;  %vm684_vm8 = vweird.f32 %v678_v22  ;;  %v688_v29 = vand.u32 2147483647, %v678_v22 }
 0xc02   :  { %v691_v31 = vor.u32 1.1754944e-38, %v690_v28  ;;  %vm689_vm10 = vcmp.eq.f32.partialorder %v688_v29, 8.507059e+37 }
 0xc06   :  { %v1095_v23 = vpop.eup %1094 }
 0xc07   :  { %v680_v24 = vmul.f32 %v1095_v23, %v678_v22  ;;  %vm685_vm7 = vweird.f32 %v1095_v23 }
 0xc08   :  { %vm686_vm9 = vmor %vm684_vm8, %vm685_vm7 }
 0xc09   :  { %v681_v25 = vsub.f32 1.0, %v680_v24 }
 0xc0b   :  { %v682_v26 = vmul.f32 %v1095_v23, %v681_v25 }
 0xc0d   :  { %v683_v27 = vadd.f32 %v1095_v23, %v682_v26 }
 0xc0f   :  { %v687_v30 = vsel %vm686_vm9, %v1095_v23, %v683_v27 }
 0xc10   :  { %v692_v0 = vsel %vm689_vm10, %v691_v31, %v687_v30 }
 0xc11   :  { %v695_v37 = vmul.f32 %v692_v0, %v594_v12  ;;  %v1010_v12 = vmul.f32 -1.442695, %v180_v11 }
 0xc56   :  { %v698_v36 = vpop.permute.xlu2 %697 }
 0xc57   :  { %v700_v1 = vmul.f32 %v698_v36, %v692_v0 }
 0xc59   :  { %702 = vrot.lane.b32.xlu0 %v700_v1, %s1228_s4 }
 0xccb   :  { %v703_v38 = vpop.permute.xlu0 %702 }
 0xccc   :  { %v705_v4 = vadd.f32 %v703_v38, %v695_v37 }
 0xcce   :  { %1096 = vtanh.f32 %v705_v4 }
 0xcd4   :  { %v1097_v39 = vpop.eup %1096 }
 0xcd5   :  { %708 = vrot.lane.b32.xlu1 %v1097_v39, %s1227_s14 }
 0xd47   :  { %v709_v40 = vpop.permute.xlu1 %708 }
 0xd48   :  { %v711_v41 = vmul.f32 %v709_v40, %v692_v0 }
 0xd4a   :  { %713 = vrot.lane.b32.xlu2 %v711_v41, %s1228_s4 }
 0xda4   :  { %v714_v5 = vpop.permute.xlu2 %713 }
 0xda5   :  { %1029 = vmatmul.msk.f32.vlgmr.msrb.gmra.mxu0 %vm94_vm5, %v714_v5  ;;  %1031 = vmatmul.msk.f32.vlgmr.msrb.gmra.mxu1 %vm94_vm5, %v714_v5 }
 0xe22   :  { %v782_v42 = vpop.f32.mrf.mxu1  ;;  %v734_v17 = vpop.f32.mrf.mxu0 }
 0xe23   :  { %v785_v43 = vadd.f32 %v782_v42, %v1315_v9  ;;  %v735_v20 = vadd.f32 %v734_v17, %v1442_v6 }
 0xe25   :  { %1098 = vtanh.f32 %v785_v43  ;;  %v1032_v45 = vmul.f32 -1.442695, %v785_v43  ;;  %v1030_v22 = vmul.f32 -1.442695, %v735_v20 }
 0xe27   :  { %1100 = vpow2.f32 %v1032_v45 }
 0xe2b   :  { %v1099_v44 = vpop.eup %1098 }
 0xe2c   :  { %808 = vrot.lane.b32.xlu0 %v1099_v44, %s1227_s14 }
 0xe2d   :  { %v1101_v46 = vpop.eup %1100 }
 0xe2e   :  { %v789_v47 = vadd.f32 1.0, %v1101_v46 }
 0xe30   :  { %1102 = vrcp.f32 %v789_v47  ;;  %v801_v53 = vand.u32 2147483648, %v789_v47  ;;  %vm795_vm12 = vweird.f32 %v789_v47  ;;  %v799_v54 = vand.u32 2147483647, %v789_v47 }
 0xe32   :  { %v802_v56 = vor.u32 1.1754944e-38, %v801_v53  ;;  %vm800_vm14 = vcmp.eq.f32.partialorder %v799_v54, 8.507059e+37 }
 0xe36   :  { %v1103_v48 = vpop.eup %1102 }
 0xe37   :  { %v791_v49 = vmul.f32 %v1103_v48, %v789_v47  ;;  %vm796_vm11 = vweird.f32 %v1103_v48 }
 0xe38   :  { %vm797_vm13 = vmor %vm795_vm12, %vm796_vm11 }
 0xe39   :  { %v792_v50 = vsub.f32 1.0, %v791_v49 }
 0xe3b   :  { %v793_v51 = vmul.f32 %v1103_v48, %v792_v50 }
 0xe3d   :  { %v794_v52 = vadd.f32 %v1103_v48, %v793_v51 }
 0xe3f   :  { %v798_v55 = vsel %vm797_vm13, %v1103_v48, %v794_v52 }
 0xe40   :  { %v803_v58 = vsel %vm800_vm14, %v802_v56, %v798_v55 }
 0xe41   :  { %v806_v60 = vmul.f32 %v803_v58, %v705_v4 }
 0xe9e   :  { %v809_v57 = vpop.permute.xlu0 %808 }
 0xe9f   :  { %v811_v59 = vmul.f32 %v809_v57, %v803_v58 }
 0xea1   :  { %813 = vrot.lane.b32.xlu1 %v811_v59, %s1228_s4 }
 0xf13   :  { %v814_v61 = vpop.permute.xlu1 %813 }
 0xf14   :  { %v1430_v32 = vadd.f32 %v814_v61, %v806_v60 }
 0xf16   :  { %1104 = vtanh.f32 %v1430_v32 }
 0xf1c   :  { %v1105_v62 = vpop.eup %1104 }
 0xf1d   :  { %819 = vrot.lane.b32.xlu2 %v1105_v62, %s1227_s14 }
 0xf77   :  { %v820_v33 = vpop.permute.xlu2 %819 }
 0xf78   :  { %v822_v63 = vmul.f32 %v820_v33, %v803_v58 }
 0xf7a   :  { %824 = vrot.lane.b32.xlu0 %v822_v63, %s1228_s4 }
 0xfec   :  { %v825_v34 = vpop.permute.xlu0 %824 }
 0xfed   :  { %1033 = vmatmul.msk.f32.vlgmr.msrb.gmra.mxu2 %vm94_vm5, %v825_v34  ;;  %1035 = vmatmul.msk.f32.vlgmr.msrb.gmra.mxu3 %vm94_vm5, %v825_v34 }
0x1070   :  { %v893_v35 = vpop.f32.mrf.mxu3 }
0x1071   :  { %v896_v2 = vadd.f32 %v893_v35, %v1315_v9  ;;  %v513_v9 = vadd.f32 %v512_v13, %v1442_v6 }
0x1073   :  { %1106 = vtanh.f32 %v896_v2  ;;  %v1036_v10 = vmul.f32 -1.442695, %v896_v2  ;;  %v1022_v16 = vmul.f32 -1.442695, %v513_v9 }
0x1075   :  { %1108 = vpow2.f32 %v1036_v10 }
0x1076   :  { %1110 = vpow2.f32 %v1010_v12  ;;  %v401_v12 = vpop.f32.mrf.mxu2 }
0x1079   :  { %v1107_v3 = vpop.eup %1106 }
0x107a   :  { %919 = vrot.lane.b32.xlu1 %v1107_v3, %s1227_s14 }
0x107b   :  { %v1109_v14 = vpop.eup %1108 }
0x107c   :  { %v900_v15 = vadd.f32 1.0, %v1109_v14  ;;  %v1111_v18 = vpop.eup %1110  ;;  %v291_v14 = vadd.f32 %v1444_v8, %v1442_v6 }
0x107d   :  { %v185_v21 = vadd.f32 1.0, %v1111_v18 }
0x107e   :  { %1112 = vrcp.f32 %v900_v15  ;;  %v912_v38 = vand.u32 2147483648, %v900_v15  ;;  %vm906_vm0 = vweird.f32 %v900_v15  ;;  %v910_v4 = vand.u32 2147483647, %v900_v15  ;;  %v623_v13 = vpop.f32.mrf.mxu2 }
0x107f   :  { %1114 = vpow2.f32 %v1022_v16  ;;  %v197_v47 = vand.u32 2147483648, %v185_v21  ;;  %vm191_vm4 = vweird.f32 %v185_v21  ;;  %v195_v49 = vand.u32 2147483647, %v185_v21 }
0x1080   :  { %1116 = vrcp.f32 %v185_v21  ;;  %v913_v5 = vor.u32 1.1754944e-38, %v912_v38  ;;  %vm911_vm2 = vcmp.eq.f32.partialorder %v910_v4, 8.507059e+37  ;;  %v1014_v9 = vmul.f32 -1.442695, %v291_v14 }
0x1081   :  { %1118 = vpow2.f32 %v1030_v22  ;;  %v198_v53 = vor.u32 1.1754944e-38, %v197_v47  ;;  %vm196_vm7 = vcmp.eq.f32.partialorder %v195_v49, 8.507059e+37  ;;  %v402_v47 = vadd.f32 %v401_v12, %v1442_v6 }
0x1082   :  { %v624_v49 = vadd.f32 %v623_v13, %v1442_v6 }
0x1084   :  { %v1113_v23 = vpop.eup %1112 }
0x1085   :  { %v1115_v24 = vpop.eup %1114  ;;  %v902_v25 = vmul.f32 %v1113_v23, %v900_v15  ;;  %vm907_vm15 = vweird.f32 %v1113_v23 }
0x1086   :  { %v518_v26 = vadd.f32 1.0, %v1115_v24  ;;  %v1117_v27 = vpop.eup %1116  ;;  %vm908_vm1 = vmor %vm906_vm0, %vm907_vm15  ;;  %v845_v15 = vpop.f32.mrf.mxu2 }
0x1087   :  { %v903_v28 = vsub.f32 1.0, %v902_v25  ;;  %v1119_v29 = vpop.eup %1118  ;;  %v187_v30 = vmul.f32 %v1117_v27, %v185_v21  ;;  %vm192_vm3 = vweird.f32 %v1117_v27  ;;  %v846_v16 = vadd.f32 %v845_v15, %v1442_v6 }
0x1088   :  { %1120 = vrcp.f32 %v518_v26  ;;  %v740_v36 = vadd.f32 1.0, %v1119_v29  ;;  %vm193_vm6 = vmor %vm191_vm4, %vm192_vm3  ;;  %v530_v57 = vand.u32 2147483648, %v518_v26  ;;  %vm524_vm9 = vweird.f32 %v518_v26 }
0x1089   :  { %v904_v31 = vmul.f32 %v1113_v23, %v903_v28  ;;  %v188_v0 = vsub.f32 1.0, %v187_v30  ;;  %v528_v59 = vand.u32 2147483647, %v518_v26  ;;  %v1034_v17 = vmul.f32 -1.442695, %v846_v16 }
0x108a   :  { %1122 = vrcp.f32 %v740_v36  ;;  %v531_v62 = vor.u32 1.1754944e-38, %v530_v57  ;;  %v752_v34 = vand.u32 2147483648, %v740_v36  ;;  %vm746_vm13 = vweird.f32 %v740_v36 }
0x108b   :  { %v905_v37 = vadd.f32 %v1113_v23, %v904_v31  ;;  %v189_v39 = vmul.f32 %v1117_v27, %v188_v0  ;;  %vm529_vm11 = vcmp.eq.f32.partialorder %v528_v59, 8.507059e+37  ;;  %v750_v2 = vand.u32 2147483647, %v740_v36 }
0x108c   :  { %v753_v7 = vor.u32 1.1754944e-38, %v752_v34  ;;  %1124 = vpow2.f32 %v1014_v9 }
0x108d   :  { %v909_v41 = vsel %vm908_vm1, %v1113_v23, %v905_v37  ;;  %v190_v42 = vadd.f32 %v1117_v27, %v189_v39  ;;  %vm751_vm15 = vcmp.eq.f32.partialorder %v750_v2, 8.507059e+37  ;;  %1126 = vpow2.f32 %v1034_v17 }
0x108e   :  { %v1121_v1 = vpop.eup %1120  ;;  %v1449_v46 = vsel %vm911_vm2, %v913_v5, %v909_v41 }
0x108f   :  { %v520_v40 = vmul.f32 %v1121_v1, %v518_v26  ;;  %v194_v50 = vsel %vm193_vm6, %v1117_v27, %v190_v42  ;;  %vm525_vm8 = vweird.f32 %v1121_v1  ;;  %v917_v8 = vmul.f32 %v1449_v46, %v1430_v32 }
0x1090   :  { %v1123_v44 = vpop.eup %1122  ;;  %v199_v54 = vsel %vm196_vm7, %v198_v53, %v194_v50  ;;  %vm526_vm10 = vmor %vm524_vm9, %vm525_vm8  ;;  %v1026_v50 = vmul.f32 -1.442695, %v624_v49 }
0x1091   :  { %v521_v43 = vsub.f32 1.0, %v520_v40  ;;  %v742_v52 = vmul.f32 %v1123_v44, %v740_v36  ;;  %v201_v58 = vmul.f32 99.0, %v199_v54  ;;  %vm747_vm12 = vweird.f32 %v1123_v44 }
0x1092   :  { %vm748_vm14 = vmor %vm746_vm13, %vm747_vm12  ;;  %v1125_v18 = vpop.eup %1124 }
0x1093   :  { %v522_v51 = vmul.f32 %v1121_v1, %v521_v43  ;;  %v743_v56 = vsub.f32 1.0, %v742_v52  ;;  %v296_v19 = vadd.f32 1.0, %v1125_v18  ;;  %v1127_v20 = vpop.eup %1126 }
0x1094   :  { %v851_v21 = vadd.f32 1.0, %v1127_v20 }
0x1095   :  { %v523_v55 = vadd.f32 %v1121_v1, %v522_v51  ;;  %v744_v61 = vmul.f32 %v1123_v44, %v743_v56  ;;  %1128 = vrcp.f32 %v296_v19  ;;  %v308_v36 = vand.u32 2147483648, %v296_v19 }
0x1096   :  { %1130 = vrcp.f32 %v851_v21  ;;  %vm302_vm1 = vweird.f32 %v296_v19  ;;  %v306_v0 = vand.u32 2147483647, %v296_v19  ;;  %v863_v40 = vand.u32 2147483648, %v851_v21 }
0x1097   :  { %v527_v60 = vsel %vm526_vm10, %v1121_v1, %v523_v55  ;;  %v745_v63 = vadd.f32 %v1123_v44, %v744_v61  ;;  %v309_v4 = vor.u32 1.1754944e-38, %v308_v36  ;;  %vm857_vm6 = vweird.f32 %v851_v21 }
0x1098   :  { %v532_v33 = vsel %vm529_vm11, %v531_v62, %v527_v60  ;;  %vm307_vm3 = vcmp.eq.f32.partialorder %v306_v0, 8.507059e+37  ;;  %v861_v5 = vand.u32 2147483647, %v851_v21  ;;  %v864_v43 = vor.u32 1.1754944e-38, %v863_v40 }
0x1099   :  { %v534_v35 = vmul.f32 99.0, %v532_v33  ;;  %v749_v3 = vsel %vm748_vm14, %v1123_v44, %v745_v63  ;;  %v92_v36 = vlaneseq }
0x109a   :  { %v754_v10 = vsel %vm751_vm15, %v753_v7, %v749_v3  ;;  %vm862_vm8 = vcmp.eq.f32.partialorder %v861_v5, 8.507059e+37 }
0x109b   :  { %v756_v11 = vmul.f32 99.0, %v754_v10  ;;  %v1129_v22 = vpop.eup %1128 }
0x109c   :  { %v298_v23 = vmul.f32 %v1129_v22, %v296_v19  ;;  %v1131_v25 = vpop.eup %1130  ;;  %vm303_vm0 = vweird.f32 %v1129_v22 }
0x109d   :  { %v853_v29 = vmul.f32 %v1131_v25, %v851_v21  ;;  %vm304_vm2 = vmor %vm302_vm1, %vm303_vm0  ;;  %vm858_vm4 = vweird.f32 %v1131_v25 }
0x109e   :  { %v299_v24 = vsub.f32 1.0, %v298_v23  ;;  %vm859_vm7 = vmor %vm857_vm6, %vm858_vm4 }
0x109f   :  { %v854_v31 = vsub.f32 1.0, %v853_v29 }
0x10a0   :  { %v300_v28 = vmul.f32 %v1129_v22, %v299_v24 }
0x10a1   :  { %v855_v38 = vmul.f32 %v1131_v25, %v854_v31 }
0x10a2   :  { %v301_v30 = vadd.f32 %v1129_v22, %v300_v28 }
0x10a3   :  { %v856_v39 = vadd.f32 %v1131_v25, %v855_v38 }
0x10a4   :  { %v305_v37 = vsel %vm304_vm2, %v1129_v22, %v301_v30 }
0x10a5   :  { %v310_v32 = vsel %vm307_vm3, %v309_v4, %v305_v37  ;;  %v860_v42 = vsel %vm859_vm7, %v1131_v25, %v856_v39 }
0x10a6   :  { %v312_v41 = vmul.f32 99.0, %v310_v32  ;;  %v865_v44 = vsel %vm862_vm8, %v864_v43, %v860_v42 }
0x10ec   :  { %v920_v45 = vpop.permute.xlu1 %919 }
0x10ed   :  { %v922_v48 = vmul.f32 %v920_v45, %v1449_v46  ;;  %v867_v45 = vmul.f32 99.0, %v865_v44 }
0x10ef   :  { %924 = vrot.lane.b32.xlu2 %v922_v48, %s1228_s4  ;;  %v1018_v48 = vmul.f32 -1.442695, %v402_v47 }
0x10f7   :  { %205 = vperm.xlu2 %1046, %v201_v58  }
0x10ff   :  { %538 = vperm.xlu2 %1046, %v534_v35  }
0x1107   :  { %760 = vperm.xlu2 %1046, %v756_v11  }
0x1149   :  { %v925_v26 = vpop.permute.xlu2 %924 }
0x114a   :  { %v927_v27 = vadd.f32 %v925_v26, %v917_v8 }
0x114c   :  { %1132 = vtanh.f32 %v927_v27 }
0x114d   :  { %1134 = vpow2.f32 %v1018_v48 }
0x114e   :  { %1136 = vpow2.f32 %v1026_v50 }
0x1151   :  { %v206_v0 = vpop.permute.xlu2 %205 }
0x1152   :  { %v1133_v1 = vpop.eup %1132 }
0x1153   :  { %930 = vrot.lane.b32.xlu0 %v1133_v1, %s1227_s14  ;;  %v1135_v51 = vpop.eup %1134  ;;  %v93_v1 = vand.u32 127, %v92_v36 }
0x1154   :  { %v407_v52 = vadd.f32 1.0, %v1135_v51  ;;  %v1137_v53 = vpop.eup %1136 }
0x1155   :  { %v629_v54 = vadd.f32 1.0, %v1137_v53  ;;  %vm313_vm4 = vcmp.eq.s32.totalorder %v93_v1, 1  ;;  %vm202_vm6 = vcmp.eq.s32.totalorder %v93_v1, 0  ;;  %vm424_vm7 = vcmp.eq.s32.totalorder %v93_v1, 2 }
0x1156   :  { %1138 = vrcp.f32 %v407_v52  ;;  %v419_v63 = vand.u32 2147483648, %v407_v52  ;;  %vm413_vm10 = vweird.f32 %v407_v52  ;;  %v417_v35 = vand.u32 2147483647, %v407_v52 }
0x1157   :  { %1140 = vrcp.f32 %v629_v54  ;;  %v641_v12 = vand.u32 2147483648, %v629_v54  ;;  %vm635_vm14 = vweird.f32 %v629_v54  ;;  %v639_v14 = vand.u32 2147483647, %v629_v54 }
0x1158   :  { %v420_v7 = vor.u32 1.1754944e-38, %v419_v63  ;;  %vm418_vm12 = vcmp.eq.f32.partialorder %v417_v35, 8.507059e+37  ;;  %v208_v39 = vsel %vm202_vm6, %v206_v0, 0.0  ;;  %vm535_vm8 = vcmp.eq.s32.totalorder %v93_v1, 3 }
0x1159   :  { %vm640_vm0 = vcmp.eq.f32.partialorder %v639_v14, 8.507059e+37  ;;  %v539_v32 = vpop.permute.xlu2 %538 }
0x115a   :  { %v541_v43 = vsel %vm535_vm8, %v539_v32, 0.0 }
0x115b   :  { %316 = vperm.xlu0 %1047, %v312_v41  }
0x115c   :  { %v1139_v55 = vpop.eup %1138 }
0x115d   :  { %v409_v56 = vmul.f32 %v1139_v55, %v407_v52  ;;  %v1141_v58 = vpop.eup %1140  ;;  %vm414_vm9 = vweird.f32 %v1139_v55 }
0x115e   :  { %v631_v60 = vmul.f32 %v1141_v58, %v629_v54  ;;  %vm415_vm11 = vmor %vm413_vm10, %vm414_vm9  ;;  %vm636_vm13 = vweird.f32 %v1141_v58  ;;  %vm646_vm9 = vcmp.eq.s32.totalorder %v93_v1, 4  ;;  %vm757_vm10 = vcmp.eq.s32.totalorder %v93_v1, 5 }
0x115f   :  { %v410_v57 = vsub.f32 1.0, %v409_v56  ;;  %vm637_vm15 = vmor %vm635_vm14, %vm636_vm13  ;;  %vm987_vm13 = vcmask 60416  }
0x1160   :  { %v632_v62 = vsub.f32 1.0, %v631_v60 }
0x1161   :  { %v411_v59 = vmul.f32 %v1139_v55, %v410_v57  ;;  %v761_v47 = vpop.permute.xlu2 %760 }
0x1162   :  { %v633_v3 = vmul.f32 %v1141_v58, %v632_v62  ;;  %v763_v49 = vsel %vm757_vm10, %v761_v47, 0.0 }
0x1163   :  { %871 = vperm.xlu0 %1047, %v867_v45   ;;  %v412_v61 = vadd.f32 %v1139_v55, %v411_v59 }
0x1164   :  { %v634_v11 = vadd.f32 %v1141_v58, %v633_v3 }
0x1165   :  { %v416_v2 = vsel %vm415_vm11, %v1139_v55, %v412_v61  ;;  %vm868_vm11 = vcmp.eq.s32.totalorder %v93_v1, 6 }
0x1166   :  { %v421_v10 = vsel %vm418_vm12, %v420_v7, %v416_v2  ;;  %v638_v9 = vsel %vm637_vm15, %v1141_v58, %v634_v11  ;;  %vm979_vm12 = vcmp.eq.s32.totalorder %v93_v1, 7 }
0x1167   :  { %v423_v13 = vmul.f32 99.0, %v421_v10 }
0x11c5   :  { %v931_v33 = vpop.permute.xlu0 %930 }
0x11c6   :  { %v933_v34 = vmul.f32 %v931_v33, %v1449_v46  ;;  %v642_v46 = vor.u32 1.1754944e-38, %v641_v12 }
0x11c8   :  { %935 = vrot.lane.b32.xlu1 %v933_v34, %s1228_s4  ;;  %v643_v15 = vsel %vm640_vm0, %v642_v46, %v638_v9 }
0x11c9   :  { %v645_v16 = vmul.f32 99.0, %v643_v15 }
0x11cd   :  { %v317_v38 = vpop.permute.xlu0 %316 }
0x11ce   :  { %v319_v4 = vsel %vm313_vm4, %v317_v38, 0.0 }
0x11cf   :  { %v320_v41 = vadd.f32 %v319_v4, %v208_v39 }
0x11d0   :  { %427 = vperm.xlu1 %1048, %v423_v13  }
0x11d5   :  { %v872_v50 = vpop.permute.xlu0 %871 }
0x11d6   :  { %v874_v52 = vsel %vm868_vm11, %v872_v50, 0.0 }
0x11d8   :  { %649 = vperm.xlu1 %1048, %v645_v16  }
0x123a   :  { %v936_v17 = vpop.permute.xlu1 %935 }
0x123b   :  { %1037 = vmatmul.msk.f32.vlgmr.msra.gmra.mxu0 %vm94_vm5, %v936_v17 }
0x1242   :  { %v428_v37 = vpop.permute.xlu1 %427 }
0x1243   :  { %v430_v40 = vsel %vm424_vm7, %v428_v37, 0.0 }
0x1244   :  { %v431_v5 = vadd.f32 %v430_v40, %v320_v41 }
0x1246   :  { %v542_v45 = vadd.f32 %v541_v43, %v431_v5 }
0x124a   :  { %v650_v42 = vpop.permute.xlu1 %649 }
0x124b   :  { %v652_v44 = vsel %vm646_vm9, %v650_v42, 0.0 }
0x124c   :  { %v653_v48 = vadd.f32 %v652_v44, %v542_v45 }
0x124e   :  { %v764_v51 = vadd.f32 %v763_v49, %v653_v48 }
0x1250   :  { %v875_v54 = vadd.f32 %v874_v52, %v764_v51 }
0x12b8   :  { %v956_v18 = vpop.f32.mrf.mxu0 }
0x12b9   :  { %v957_v19 = vadd.f32 %v956_v18, %v1442_v6 }
0x12bb   :  { %v1038_v20 = vmul.f32 -1.442695, %v957_v19 }
0x12bd   :  { %1142 = vpow2.f32 %v1038_v20 }
0x12c3   :  { %v1143_v21 = vpop.eup %1142 }
0x12c4   :  { %v962_v22 = vadd.f32 1.0, %v1143_v21 }
0x12c6   :  { %1144 = vrcp.f32 %v962_v22  ;;  %v974_v8 = vand.u32 2147483648, %v962_v22  ;;  %v972_v27 = vand.u32 2147483647, %v962_v22  ;;  %vm968_vm2 = vweird.f32 %v962_v22 }
0x12c8   :  { %v975_v29 = vor.u32 1.1754944e-38, %v974_v8  ;;  %vm973_vm5 = vcmp.eq.f32.partialorder %v972_v27, 8.507059e+37 }
0x12cc   :  { %v1145_v23 = vpop.eup %1144 }
0x12cd   :  { %v964_v24 = vmul.f32 %v1145_v23, %v962_v22  ;;  %vm969_vm1 = vweird.f32 %v1145_v23 }
0x12ce   :  { %vm970_vm3 = vmor %vm968_vm2, %vm969_vm1 }
0x12cf   :  { %v965_v25 = vsub.f32 1.0, %v964_v24 }
0x12d1   :  { %v966_v26 = vmul.f32 %v1145_v23, %v965_v25 }
0x12d3   :  { %v967_v28 = vadd.f32 %v1145_v23, %v966_v26 }
0x12d5   :  { %v971_v30 = vsel %vm970_vm3, %v1145_v23, %v967_v28 }
0x12d6   :  { %v976_v31 = vsel %vm973_vm5, %v975_v29, %v971_v30 }
0x12d7   :  { %v978_v6 = vmul.f32 99.0, %v976_v31 }
0x12d9   :  { %982 = vperm.xlu1 %1048, %v978_v6  }
0x134b   :  { %v983_v53 = vpop.permute.xlu1 %982 }
0x134c   :  { %v985_v55 = vsel %vm979_vm12, %v983_v53, 0.0 }
0x134d   :  { %v986_v56 = vadd.f32 %v985_v55, %v875_v54 }
0x134f   :  { %988 = vst.msk [vmem:[#allocation8] sm:$0xf] %vm987_vm13, %v986_v56 }
0x1350   :  { %999 = dma.vmem_to_hbm [thread:$0]  %s995_s24, 64, %s997_s27, [#allocation5]  }
0x1351   :  { %1222 = dma.done.wait [#allocation5], 64  }
0x1352   :  { %1223 = vsyncadd [#allocation5], 4294967232 }
0x1353   :  { %1004 = vsyncpa [#allocation4], 1 }
0x1354   :  { %1005 = vsyncpa [#allocation7], 1 }
0x1355   :  { %1006 = vsyncpa [#allocation5], 1 }

</bundles_post_ra>
